<compile_context>
chip_gen: v7x
topology: tpu7x:2x2x1
jax: 0.10.0
libtpu: 0.0.40
codegen_flags: <defaults>
</compile_context>

<pallas_src>
import numpy as np

import jax
import jax.numpy as jnp
from jax.experimental import pallas as pl
from jax.experimental.pallas import tpu as pltpu


# ----------------------------- Pallas kernel --------------------------------

def _ensemble_kernel(x_ref, w_ref, b_ref, out_ref):
    """Fully-folded ensemble forward: one matmul + bias.

    x_ref   : (B_pad, C*H*W)  bf16  flattened input image(s)
    w_ref   : (C*H*W, K_pad)  bf16  effective (resize+GAP+heads+mean) weight
    b_ref   : (1, K_pad)      f32   ensemble-mean bias
    out_ref : (B_pad, K_pad)  f32   ensemble-mean logits (lane-dense)
    """
    acc = jnp.dot(x_ref[...], w_ref[...], preferred_element_type=jnp.float32)
    out_ref[...] = acc + b_ref[...]


def _round_up(n, m):
    return (n + m - 1) // m * m


def ensemble_logits_pallas(x_flat, w_eff, b_mean):
    """x_flat: (B, D) f32, w_eff: (D, K) f32, b_mean: (1, K) f32 -> (B, K) f32."""
    B, D = x_flat.shape
    K = w_eff.shape[-1]
    B_pad = _round_up(max(B, 1), 8)      # full f32 sublanes in the output
    K_pad = _round_up(K, 128)            # lane-dense output (no masked stores)

    x_p = jnp.pad(x_flat.astype(jnp.bfloat16), ((0, B_pad - B), (0, 0)))
    w_p = jnp.pad(w_eff.astype(jnp.bfloat16), ((0, 0), (0, K_pad - K)))
    b_p = jnp.pad(b_mean.astype(jnp.float32), ((0, 0), (0, K_pad - K)))

    out = pl.pallas_call(
        _ensemble_kernel,
        out_shape=jax.ShapeDtypeStruct((B_pad, K_pad), jnp.float32),
        in_specs=[
            pl.BlockSpec(memory_space=pltpu.MemorySpace.VMEM),
            pl.BlockSpec(memory_space=pltpu.MemorySpace.VMEM),
            pl.BlockSpec(memory_space=pltpu.MemorySpace.VMEM),
        ],
        out_specs=pl.BlockSpec(memory_space=pltpu.MemorySpace.VMEM),
    )(x_p, w_p, b_p)
    return out[:B, :K]


# --------------------- weight-prep (done once, not per step) -----------------

def _nearest_pool_matrix(H, W, size):
    """m[h, w]: weight each source pixel gets from nearest-resize(size) + GAP."""
    # PyTorch 'nearest': src = floor(dst * in/out) == exact integer (i*in)//out.
    hi = (np.arange(size) * H) // size
    wi = (np.arange(size) * W) // size
    cnt_h = np.bincount(hi, minlength=H).astype(np.float64)
    cnt_w = np.bincount(wi, minlength=W).astype(np.float64)
    return (np.outer(cnt_h, cnt_w) / float(size * size)).astype(np.float32)  # (H, W)


def fold_ensemble_weights(input_sizes, weights, biases, H, W):
    """Bake resize+GAP+per-model heads+ensemble mean into one (C*H*W, K) weight.

    weights: (L, C, K), biases: (L, 1, K) -> W_eff (C*H*W, K), b_mean (1, K).
    """
    L, C, K = weights.shape
    m = jnp.asarray(
        np.stack([_nearest_pool_matrix(H, W, s) for s in input_sizes], axis=0)
    )                                                            # (L, H, W)
    w_eff = jnp.einsum("lhw,lck->chwk", m, weights) / float(L)   # (C, H, W, K)
    w_eff = w_eff.reshape(C * H * W, K)
    b_mean = jnp.mean(biases, axis=0).reshape(1, K)              # (1, K)
    return w_eff, b_mean


def ensemble_forward(x, input_sizes, weights, biases):
    """Ensemble_logits.forward(x, diversity=False) with synthetic GAP+linear models."""
    B, C, H, W = x.shape
    # In real use, fold once at weight-prep time; here it is recomputed for clarity.
    w_eff, b_mean = fold_ensemble_weights(input_sizes, weights, biases, H, W)
    return ensemble_logits_pallas(x.reshape(B, C * H * W), w_eff, b_mean)


# --------------------------------- main ---------------------------------------

if __name__ == "__main__":
    B, C, H, W = 2, 4, 16, 16          # input image x: (B, C, H, W)
    NUM_CLASSES = 1000                 # module default; padded to 1024 in-kernel
    INPUT_SIZES = (12, 16, 20)         # per-model input_size (L = 3 models)
    L = len(INPUT_SIZES)

    key = jax.random.PRNGKey(0)
    kx, kw, kb = jax.random.split(key, 3)
    x = jax.random.normal(kx, (B, C, H, W), dtype=jnp.float32)
    weights = jax.random.normal(kw, (L, C, NUM_CLASSES), dtype=jnp.float32) * 0.1
    biases = jax.random.normal(kb, (L, 1, NUM_CLASSES), dtype=jnp.float32) * 0.01

    out = ensemble_forward(x, INPUT_SIZES, weights, biases)
    out = jax.block_until_ready(out)

    # pure-JAX f32 reference: per-model nearest resize -> GAP -> linear, then mean.
    def nearest_resize_nchw(xx, size):
        _, _, Hh, Ww = xx.shape
        hi = (jnp.arange(size) * Hh) // size     # exact integer nearest mapping
        wi = (jnp.arange(size) * Ww) // size
        return xx[:, :, hi, :][:, :, :, wi]

    feats_ref = jnp.stack(
        [jnp.mean(nearest_resize_nchw(x, s), axis=(2, 3)) for s in INPUT_SIZES],
        axis=0,
    )                                                     # (L, B, C)
    ref = jnp.mean(jnp.einsum("lbc,lck->lbk", feats_ref, weights) + biases, axis=0)

    assert out.shape == (B, NUM_CLASSES)
    # bf16 MXU inputs with f32 accumulation -> small rounding vs the f32 reference.
    assert jnp.allclose(out, ref, atol=5e-3, rtol=5e-2), float(
        jnp.max(jnp.abs(out - ref))
    )

    # TODO(synk): diversity=True path (host-side numpy RNG for random resize/pad)
    # and the external pretrained backbones in model_list are not translatable
    # into the kernel; they are replaced by GAP+linear heads folded into W_eff.
    print("KERNEL_OK")
</pallas_src>

<mosaic_0001>
module attributes {stable_mosaic.version = 11 : i64} {
  func.func @_ensemble_kernel(%arg0: memref<8x1024xbf16, #tpu.memory_space<vmem>>, %arg1: memref<1024x1024xbf16, #tpu.memory_space<vmem>>, %arg2: memref<1x1024xf32, #tpu.memory_space<vmem>>, %arg3: memref<8x1024xf32, #tpu.memory_space<vmem>>) attributes {dimension_semantics = [], scalar_prefetch = 0 : i64, scratch_operands = 0 : i64, tpu.core_type = #tpu.core_type<tc>} {
    %c0 = arith.constant 0 : index
    %c0_0 = arith.constant 0 : index
    %0 = vector.load %arg0[%c0, %c0_0] : memref<8x1024xbf16, #tpu.memory_space<vmem>>, vector<8x1024xbf16>
    %c0_1 = arith.constant 0 : index
    %c0_2 = arith.constant 0 : index
    %1 = vector.load %arg1[%c0_1, %c0_2] : memref<1024x1024xbf16, #tpu.memory_space<vmem>>, vector<1024x1024xbf16>
    %cst = arith.constant dense<0.000000e+00> : vector<8x1024xf32>
    %2 = tpu.matmul %0, %1, %cst {dimension_numbers = #tpu.dot_dimension_numbers<[1], [0], [0], [1], [0, 0, 1, 1], [], []>} : vector<8x1024xbf16>, vector<1024x1024xbf16>, vector<8x1024xf32> -> vector<8x1024xf32>
    %c0_3 = arith.constant 0 : index
    %c0_4 = arith.constant 0 : index
    %3 = vector.load %arg2[%c0_3, %c0_4] : memref<1x1024xf32, #tpu.memory_space<vmem>>, vector<1x1024xf32>
    %4 = vector.broadcast %3 : vector<1x1024xf32> to vector<8x1024xf32>
    %5 = arith.addf %2, %4 : vector<8x1024xf32>
    %c0_5 = arith.constant 0 : index
    %c0_6 = arith.constant 0 : index
    %6 = vector.load %arg3[%c0_5, %c0_6] : memref<8x1024xf32, #tpu.memory_space<vmem>>, vector<8x1024xf32>
    tpu.vector_store %arg3[%c0_5, %c0_6], %5 {strides = array<i32>} : memref<8x1024xf32, #tpu.memory_space<vmem>>, vector<8x1024xf32>,
    return
  }
}

</mosaic_0001>

<bundles_post_ra>
// kernel: tpu_custom_call.1
= control target key start
LH: loop header
LB: loop body
LE: loop exit
PB: predicated region body
PF: predicated region fallthrough
CT: control target
= control target key end

     0   :  { %8 = vsyncpa [#allocation3], 0  ;;  %s4728_s0 = inlined_call_operand.hbm [shape: bf16[8,1024], index: 0, kind: input, shape index: {}]   ;;  %s4729_s1 = inlined_call_operand.hbm [shape: bf16[1024,1024], index: 1, kind: input, shape index: {}]   ;;  %s4730_s2 = inlined_call_operand.hbm [shape: f32[1,1024], index: 2, kind: input, shape index: {}]   ;;  %s4731_s3 = inlined_call_operand.hbm [shape: f32[8,1024], index: 3, kind: output, shape index: {}]  }
   0x1   :  { %9 = vsyncpa [#allocation6], 0 }
   0x2   :  { %10 = vsyncpa [#allocation4], 0  ;;  %s4562_s12 = smov [#allocation5]   ;;  %s4468_s16 = scalar_lea.hbm %s4729_s1, 65536 }
   0x3   :  { %s26_s13 = sshll.u32 %s4562_s12, 4  ;;  %p4469_p0 = scmp.ne.s32.totalorder %s4729_s1, %s4468_s16  ;;  %s27_s13 = int_to_ptr.vmem [resolvable:$true] %s26_s13 }
   0x4   :  { %p4472_p1 = scmp.lt.u32.totalorder %s4468_s16, %s4729_s1 }
   0x6   :  { %p4474_p2 = pnand %p4472_p1, %p4469_p0 }
   0x8   :  { %4477 = shalt.err (!%p4474_p2)
}
   0x9   :  { %s4478_s21 = scalar_lea.vmem %s27_s13, 65536  ;;  %p4483_p4 = scmp.lt.s32.totalorder %s27_s13, %s27_s13 }
   0xa   :  { %p4479_p3 = scmp.ne.s32.totalorder %s27_s13, %s4478_s21  ;;  %p4484_p5 = scmp.lt.s32.totalorder %s4478_s21, %s4478_s21 }
   0xc   :  { %p4485_p6 = por %p4484_p5, %p4483_p4 }
   0xe   :  { %p4486_p7 = pnand %p4485_p6, %p4479_p3 }
  0x10   :  { %4489 = shalt.err (!%p4486_p7)
}
  0x11   :  { %s4563_s22 = smov 512   ;;  %s4564_s23 = smov 32  }
  0x12   :  { %32 = dma.hbm_to_vmem [thread:$0]  %s4729_s1, 65536, %s27_s13, [#allocation6], %s4563_s22, %s4563_s22, %s4564_s23  }
  0x13   :  { %s4565_s26 = smov [#allocation2]   ;;  %s4566_s28 = smov [#allocation7]  }
  0x14   :  { %s17_s27 = sshll.u32 %s4565_s26, 4  ;;  %s39_s29 = sshll.u32 %s4566_s28, 4  ;;  %s18_s27 = int_to_ptr.vmem [resolvable:$true] %s17_s27  ;;  %s40_s29 = int_to_ptr.vmem [resolvable:$true] %s39_s29 }
  0x15   :  { %s4490_s5 = scalar_lea.hbm %s4728_s0, 512 }
  0x16   :  { %p4491_p8 = scmp.ne.s32.totalorder %s4728_s0, %s4490_s5  ;;  %p4494_p9 = scmp.lt.u32.totalorder %s4490_s5, %s4728_s0 }
  0x18   :  { %p4496_p10 = pnand %p4494_p9, %p4491_p8 }
  0x1a   :  { %4499 = shalt.err (!%p4496_p10)
}
  0x1b   :  { %s4500_s1 = scalar_lea.vmem %s18_s27, 512  ;;  %p4505_p12 = scmp.lt.s32.totalorder %s18_s27, %s18_s27 }
  0x1c   :  { %p4501_p11 = scmp.ne.s32.totalorder %s18_s27, %s4500_s1  ;;  %p4506_p13 = scmp.lt.s32.totalorder %s4500_s1, %s4500_s1 }
  0x1e   :  { %p4507_p0 = por %p4506_p13, %p4505_p12 }
  0x20   :  { %p4508_p1 = pnand %p4507_p0, %p4501_p11 }
  0x22   :  { %4511 = shalt.err (!%p4508_p1)
}
  0x23   :  { %20 = dma.hbm_to_vmem [thread:$0]  %s4728_s0, 512, %s18_s27, [#allocation3]  }
  0x24   :  { %s4512_s14 = scalar_lea.hbm %s4730_s2, 128 }
  0x25   :  { %p4513_p2 = scmp.ne.s32.totalorder %s4730_s2, %s4512_s14  ;;  %p4516_p3 = scmp.lt.u32.totalorder %s4512_s14, %s4730_s2 }
  0x27   :  { %p4518_p4 = pnand %p4516_p3, %p4513_p2 }
  0x29   :  { %4521 = shalt.err (!%p4518_p4)
}
  0x2a   :  { %s4522_s19 = scalar_lea.vmem %s40_s29, 128  ;;  %p4527_p6 = scmp.lt.s32.totalorder %s40_s29, %s40_s29 }
  0x2b   :  { %p4523_p5 = scmp.ne.s32.totalorder %s40_s29, %s4522_s19  ;;  %p4528_p7 = scmp.lt.s32.totalorder %s4522_s19, %s4522_s19 }
  0x2d   :  { %p4529_p8 = por %p4528_p7, %p4527_p6 }
  0x2f   :  { %p4530_p9 = pnand %p4529_p8, %p4523_p5 }
  0x31   :  { %4533 = shalt.err (!%p4530_p9)
}
  0x32   :  { %42 = dma.hbm_to_vmem [thread:$0]  %s4730_s2, 128, %s40_s29, [#allocation6]  }
  0x33   :  { %4556 = dma.done.wait [#allocation3], 512  }
  0x34   :  { %4557 = vsyncadd [#allocation3], 4294966784 }
  0x35   :  { %4558 = dma.done.wait [#allocation6], 65664  }
  0x36   :  { %4559 = vsyncadd [#allocation6], 4294901632  ;;  %v56_v0 = vld [vmem:[#allocation5] sm:$0xff]  ;;  %v57_v2 = vld [vmem:[#allocation5 + $0x8] sm:$0xff]  ;;  %s4567_s2 = smov [#allocation8]  }
  0x37   :  { %v60_v1 = vld [vmem:[#allocation5 + $0x20] sm:$0xff]  ;;  %v61_v4 = vld [vmem:[#allocation5 + $0x28] sm:$0xff]  ;;  %s3868_s21 = sshll.u32 %s4567_s2, 4  ;;  %s3869_s21 = int_to_ptr.vmem [resolvable:$true] %s3868_s21 }
  0x38   :  { %v3887_v3 = vcombine.high %v56_v0, %v60_v1  ;;  %v3886_v5 = vcombine.low %v56_v0, %v60_v1  ;;  %v64_v6 = vld [vmem:[#allocation5 + $0x40] sm:$0xff]  ;;  %v3889_v8 = vcombine.high %v57_v2, %v61_v4  ;;  %v3888_v9 = vcombine.low %v57_v2, %v61_v4  ;;  %v65_v11 = vld [vmem:[#allocation5 + $0x48] sm:$0xff]  ;;  %s4534_s22 = scalar_lea.vmem %s3869_s21, 1024  ;;  %p4539_p11 = scmp.lt.s32.totalorder %s3869_s21, %s3869_s21 }
  0x39   :  { %v68_v7 = vld [vmem:[#allocation5 + $0x60] sm:$0xff]  ;;  %v69_v12 = vld [vmem:[#allocation5 + $0x68] sm:$0xff]  ;;  %p4535_p10 = scmp.ne.s32.totalorder %s3869_s21, %s4534_s22  ;;  %p4540_p12 = scmp.lt.s32.totalorder %s4534_s22, %s4534_s22 }
  0x3a   :  { %v3895_v10 = vcombine.high %v64_v6, %v68_v7  ;;  %v72_v13 = vld [vmem:[#allocation5 + $0x80] sm:$0xff]  ;;  %3198 = vmatprep.subr.bf16.mxu0 %v3887_v3  ;;  %v3897_v14 = vcombine.high %v65_v11, %v69_v12  ;;  %v73_v16 = vld [vmem:[#allocation5 + $0x88] sm:$0xff]  ;;  %3362 = vmatprep.subr.bf16.mxu1 %v3889_v8  ;;  %v3894_v18 = vcombine.low %v64_v6, %v68_v7 }
  0x3b   :  { %v76_v15 = vld [vmem:[#allocation5 + $0xa0] sm:$0xff]  ;;  %v77_v17 = vld [vmem:[#allocation5 + $0xa8] sm:$0xff]  ;;  %3199 = vmatpush1.bf16.msra.mxu0 %v3886_v5  ;;  %3363 = vmatpush1.bf16.msra.mxu1 %v3888_v9  ;;  %v3896_v19 = vcombine.low %v65_v11, %v69_v12  ;;  %p4541_p13 = por %p4540_p12, %p4539_p11 }
  0x3c   :  { %3200 = vmatprep.subr.bf16.mxu0 %v3895_v10  ;;  %v3903_v20 = vcombine.high %v72_v13, %v76_v15  ;;  %3364 = vmatprep.subr.bf16.mxu1 %v3897_v14  ;;  %v3905_v21 = vcombine.high %v73_v16, %v77_v17  ;;  %v80_v22 = vld [vmem:[#allocation5 + $0xc0] sm:$0xff]  ;;  %v81_v24 = vld [vmem:[#allocation5 + $0xc8] sm:$0xff]  ;;  %v3902_v26 = vcombine.low %v72_v13, %v76_v15 }
  0x3d   :  { %v84_v23 = vld [vmem:[#allocation5 + $0xe0] sm:$0xff]  ;;  %v85_v25 = vld [vmem:[#allocation5 + $0xe8] sm:$0xff]  ;;  %v3904_v27 = vcombine.low %v73_v16, %v77_v17  ;;  %p4542_p0 = pnand %p4541_p13, %p4535_p10 }
  0x3e   :  { %v3911_v28 = vcombine.high %v80_v22, %v84_v23  ;;  %v3913_v29 = vcombine.high %v81_v24, %v85_v25  ;;  %v88_v30 = vld [vmem:[#allocation5 + $0x100] sm:$0xff]  ;;  %v89_v32 = vld [vmem:[#allocation5 + $0x108] sm:$0xff]  ;;  %v3910_v34 = vcombine.low %v80_v22, %v84_v23  ;;  %v3912_v35 = vcombine.low %v81_v24, %v85_v25 }
  0x3f   :  { %3201 = vmatpush1.bf16.msra.mxu0 %v3894_v18  ;;  %3365 = vmatpush1.bf16.msra.mxu1 %v3896_v19  ;;  %v92_v31 = vld [vmem:[#allocation5 + $0x120] sm:$0xff]  ;;  %v93_v33 = vld [vmem:[#allocation5 + $0x128] sm:$0xff] }
  0x40   :  { %3202 = vmatprep.subr.bf16.mxu0 %v3903_v20  ;;  %3366 = vmatprep.subr.bf16.mxu1 %v3905_v21  ;;  %v3919_v36 = vcombine.high %v88_v30, %v92_v31  ;;  %v3921_v37 = vcombine.high %v89_v32, %v93_v33  ;;  %v96_v38 = vld [vmem:[#allocation5 + $0x140] sm:$0xff]  ;;  %v97_v40 = vld [vmem:[#allocation5 + $0x148] sm:$0xff]  ;;  %v3918_v42 = vcombine.low %v88_v30, %v92_v31 }
  0x41   :  { %v100_v39 = vld [vmem:[#allocation5 + $0x160] sm:$0xff]  ;;  %v101_v41 = vld [vmem:[#allocation5 + $0x168] sm:$0xff]  ;;  %v3920_v43 = vcombine.low %v89_v32, %v93_v33 }
  0x42   :  { %v3927_v44 = vcombine.high %v96_v38, %v100_v39  ;;  %v3929_v45 = vcombine.high %v97_v40, %v101_v41  ;;  %v104_v46 = vld [vmem:[#allocation5 + $0x180] sm:$0xff]  ;;  %v105_v48 = vld [vmem:[#allocation5 + $0x188] sm:$0xff]  ;;  %v3926_v50 = vcombine.low %v96_v38, %v100_v39  ;;  %v3928_v51 = vcombine.low %v97_v40, %v101_v41 }
  0x43   :  { %3203 = vmatpush1.bf16.msra.mxu0 %v3902_v26  ;;  %3367 = vmatpush1.bf16.msra.mxu1 %v3904_v27  ;;  %v108_v47 = vld [vmem:[#allocation5 + $0x1a0] sm:$0xff]  ;;  %v109_v49 = vld [vmem:[#allocation5 + $0x1a8] sm:$0xff] }
  0x44   :  { %3204 = vmatprep.subr.bf16.mxu0 %v3911_v28  ;;  %3368 = vmatprep.subr.bf16.mxu1 %v3913_v29  ;;  %v3935_v52 = vcombine.high %v104_v46, %v108_v47  ;;  %v4624_v53 = vld [vmem:[#allocation2] sm:$0xff]  ;;  %v3937_v54 = vcombine.high %v105_v48, %v109_v49  ;;  %v113_v58 = vld [vmem:[#allocation5 + $0x1c8] sm:$0xff]  ;;  %v3934_v60 = vcombine.low %v104_v46, %v108_v47 }
  0x45   :  { %v112_v55 = vld [vmem:[#allocation5 + $0x1c0] sm:$0xff]  ;;  %v4628_v57 = vcombine.high %v4624_v53, %v4624_v53  ;;  %v117_v59 = vld [vmem:[#allocation5 + $0x1e8] sm:$0xff]  ;;  %v3936_v61 = vcombine.low %v105_v48, %v109_v49 }
  0x46   :  { %v116_v56 = vld [vmem:[#allocation5 + $0x1e0] sm:$0xff]  ;;  %v3945_v63 = vcombine.high %v113_v58, %v117_v59  ;;  %v121_v2 = vld [vmem:[#allocation5 + $0x208] sm:$0xff]  ;;  %v3944_v5 = vcombine.low %v113_v58, %v117_v59 }
  0x47   :  { %3205 = vmatpush1.bf16.msra.mxu0 %v3910_v34  ;;  %3369 = vmatpush1.bf16.msra.mxu1 %v3912_v35  ;;  %v3943_v62 = vcombine.high %v112_v55, %v116_v56  ;;  %v120_v0 = vld [vmem:[#allocation5 + $0x200] sm:$0xff]  ;;  %v125_v3 = vld [vmem:[#allocation5 + $0x228] sm:$0xff]  ;;  %v3942_v4 = vcombine.low %v112_v55, %v116_v56 }
  0x48   :  { %3206 = vmatprep.subr.bf16.mxu0 %v3919_v36  ;;  %3370 = vmatprep.subr.bf16.mxu1 %v3921_v37  ;;  %v124_v1 = vld [vmem:[#allocation5 + $0x220] sm:$0xff]  ;;  %v3953_v7 = vcombine.high %v121_v2, %v125_v3  ;;  %v129_v10 = vld [vmem:[#allocation5 + $0x248] sm:$0xff]  ;;  %v3952_v13 = vcombine.low %v121_v2, %v125_v3 }
  0x49   :  { %3230 = vmatprep.mubr.bf16.mxu0 %v4628_v57  ;;  %3394 = vmatprep.mubr.bf16.mxu1 %v4628_v57  ;;  %v3951_v6 = vcombine.high %v120_v0, %v124_v1  ;;  %v128_v8 = vld [vmem:[#allocation5 + $0x240] sm:$0xff]  ;;  %v133_v11 = vld [vmem:[#allocation5 + $0x268] sm:$0xff]  ;;  %v3950_v12 = vcombine.low %v120_v0, %v124_v1 }
  0x4a   :  { %v132_v9 = vld [vmem:[#allocation5 + $0x260] sm:$0xff]  ;;  %v3961_v15 = vcombine.high %v129_v10, %v133_v11  ;;  %v137_v18 = vld [vmem:[#allocation5 + $0x288] sm:$0xff]  ;;  %v3960_v21 = vcombine.low %v129_v10, %v133_v11 }
  0x4b   :  { %3207 = vmatpush1.bf16.msra.mxu0 %v3918_v42  ;;  %3371 = vmatpush1.bf16.msra.mxu1 %v3920_v43  ;;  %v3959_v14 = vcombine.high %v128_v8, %v132_v9  ;;  %v136_v16 = vld [vmem:[#allocation5 + $0x280] sm:$0xff]  ;;  %v141_v19 = vld [vmem:[#allocation5 + $0x2a8] sm:$0xff]  ;;  %v3958_v20 = vcombine.low %v128_v8, %v132_v9 }
  0x4c   :  { %3208 = vmatprep.subr.bf16.mxu0 %v3927_v44  ;;  %3372 = vmatprep.subr.bf16.mxu1 %v3929_v45  ;;  %v140_v17 = vld [vmem:[#allocation5 + $0x2a0] sm:$0xff]  ;;  %v3969_v23 = vcombine.high %v137_v18, %v141_v19  ;;  %v145_v26 = vld [vmem:[#allocation5 + $0x2c8] sm:$0xff]  ;;  %v3968_v29 = vcombine.low %v137_v18, %v141_v19 }
  0x4d   :  { %v3967_v22 = vcombine.high %v136_v16, %v140_v17  ;;  %v144_v24 = vld [vmem:[#allocation5 + $0x2c0] sm:$0xff]  ;;  %v149_v27 = vld [vmem:[#allocation5 + $0x2e8] sm:$0xff]  ;;  %v3966_v28 = vcombine.low %v136_v16, %v140_v17 }
  0x4e   :  { %v148_v25 = vld [vmem:[#allocation5 + $0x2e0] sm:$0xff]  ;;  %v3977_v31 = vcombine.high %v145_v26, %v149_v27  ;;  %v153_v34 = vld [vmem:[#allocation5 + $0x308] sm:$0xff]  ;;  %v3976_v37 = vcombine.low %v145_v26, %v149_v27 }
  0x4f   :  { %3209 = vmatpush1.bf16.msra.mxu0 %v3926_v50  ;;  %3373 = vmatpush1.bf16.msra.mxu1 %v3928_v51  ;;  %v3975_v30 = vcombine.high %v144_v24, %v148_v25  ;;  %v152_v32 = vld [vmem:[#allocation5 + $0x300] sm:$0xff]  ;;  %v157_v35 = vld [vmem:[#allocation5 + $0x328] sm:$0xff]  ;;  %v3974_v36 = vcombine.low %v144_v24, %v148_v25 }
  0x50   :  { %3210 = vmatprep.subr.bf16.mxu0 %v3935_v52  ;;  %3374 = vmatprep.subr.bf16.mxu1 %v3937_v54  ;;  %v156_v33 = vld [vmem:[#allocation5 + $0x320] sm:$0xff]  ;;  %v3985_v39 = vcombine.high %v153_v34, %v157_v35  ;;  %v161_v42 = vld [vmem:[#allocation5 + $0x348] sm:$0xff]  ;;  %v3984_v45 = vcombine.low %v153_v34, %v157_v35 }
  0x51   :  { %v3983_v38 = vcombine.high %v152_v32, %v156_v33  ;;  %v160_v40 = vld [vmem:[#allocation5 + $0x340] sm:$0xff]  ;;  %v165_v43 = vld [vmem:[#allocation5 + $0x368] sm:$0xff]  ;;  %v3982_v44 = vcombine.low %v152_v32, %v156_v33 }
  0x52   :  { %v164_v41 = vld [vmem:[#allocation5 + $0x360] sm:$0xff]  ;;  %v3993_v47 = vcombine.high %v161_v42, %v165_v43  ;;  %v169_v50 = vld [vmem:[#allocation5 + $0x388] sm:$0xff]  ;;  %v3992_v54 = vcombine.low %v161_v42, %v165_v43 }
  0x53   :  { %3211 = vmatpush1.bf16.msra.mxu0 %v3934_v60  ;;  %3375 = vmatpush1.bf16.msra.mxu1 %v3936_v61  ;;  %v3991_v46 = vcombine.high %v160_v40, %v164_v41  ;;  %v168_v48 = vld [vmem:[#allocation5 + $0x380] sm:$0xff]  ;;  %v173_v51 = vld [vmem:[#allocation5 + $0x3a8] sm:$0xff]  ;;  %v3990_v52 = vcombine.low %v160_v40, %v164_v41 }
  0x54   :  { %3212 = vmatprep.subr.bf16.mxu0 %v3943_v62  ;;  %3376 = vmatprep.subr.bf16.mxu1 %v3945_v63  ;;  %v172_v49 = vld [vmem:[#allocation5 + $0x3a0] sm:$0xff]  ;;  %v4001_v56 = vcombine.high %v169_v50, %v173_v51  ;;  %v177_v60 = vld [vmem:[#allocation5 + $0x3c8] sm:$0xff]  ;;  %v4000_v63 = vcombine.low %v169_v50, %v173_v51 }
  0x55   :  { %v3999_v55 = vcombine.high %v168_v48, %v172_v49  ;;  %v176_v58 = vld [vmem:[#allocation5 + $0x3c0] sm:$0xff]  ;;  %v181_v61 = vld [vmem:[#allocation5 + $0x3e8] sm:$0xff]  ;;  %v3998_v62 = vcombine.low %v168_v48, %v172_v49 }
  0x56   :  { %v180_v59 = vld [vmem:[#allocation5 + $0x3e0] sm:$0xff]  ;;  %v4009_v1 = vcombine.high %v177_v60, %v181_v61 }
  0x57   :  { %3213 = vmatpush1.bf16.msra.mxu0 %v3942_v4  ;;  %3377 = vmatpush1.bf16.msra.mxu1 %v3944_v5  ;;  %v4007_v0 = vcombine.high %v176_v58, %v180_v59  ;;  %v184_v2 = vld [vmem:[#allocation5 + $0x400] sm:$0xff]  ;;  %v185_v4 = vld [vmem:[#allocation5 + $0x408] sm:$0xff] }
  0x58   :  { %3214 = vmatprep.subr.bf16.mxu0 %v3951_v6  ;;  %3378 = vmatprep.subr.bf16.mxu1 %v3953_v7  ;;  %v188_v3 = vld [vmem:[#allocation5 + $0x420] sm:$0xff]  ;;  %v189_v5 = vld [vmem:[#allocation5 + $0x428] sm:$0xff]  ;;  %v4006_v6 = vcombine.low %v176_v58, %v180_v59  ;;  %v4008_v7 = vcombine.low %v177_v60, %v181_v61 }
  0x59   :  { %v4015_v8 = vcombine.high %v184_v2, %v188_v3  ;;  %v4017_v9 = vcombine.high %v185_v4, %v189_v5  ;;  %v192_v10 = vld [vmem:[#allocation5 + $0x440] sm:$0xff]  ;;  %v4014_v16 = vcombine.low %v184_v2, %v188_v3  ;;  %v4016_v17 = vcombine.low %v185_v4, %v189_v5 }
  0x5a   :  { %v196_v11 = vld [vmem:[#allocation5 + $0x460] sm:$0xff] }
  0x5b   :  { %3215 = vmatpush1.bf16.msra.mxu0 %v3950_v12  ;;  %3379 = vmatpush1.bf16.msra.mxu1 %v3952_v13  ;;  %v4634_v12 = vcombine.low %v4624_v53, %v4624_v53  ;;  %v193_v13 = vld [vmem:[#allocation5 + $0x448] sm:$0xff]  ;;  %v4023_v18 = vcombine.high %v192_v10, %v196_v11  ;;  %v4022_v24 = vcombine.low %v192_v10, %v196_v11 }
  0x5c   :  { %3216 = vmatprep.subr.bf16.mxu0 %v3959_v14  ;;  %3380 = vmatprep.subr.bf16.mxu1 %v3961_v15  ;;  %v197_v14 = vld [vmem:[#allocation5 + $0x468] sm:$0xff] }
  0x5d   :  { %v4636_v15 = vld [vmem:[#allocation2 + $0x8] sm:$0xff]  ;;  %v4025_v19 = vcombine.high %v193_v13, %v197_v14  ;;  %v4024_v25 = vcombine.low %v193_v13, %v197_v14 }
  0x5e   :  { %v201_v53 = vld [vmem:[#allocation5 + $0x488] sm:$0xff] }
  0x5f   :  { %3217 = vmatpush1.bf16.msra.mxu0 %v3958_v20  ;;  %3381 = vmatpush1.bf16.msra.mxu1 %v3960_v21  ;;  %v200_v20 = vld [vmem:[#allocation5 + $0x480] sm:$0xff] }
  0x60   :  { %3218 = vmatprep.subr.bf16.mxu0 %v3967_v22  ;;  %3382 = vmatprep.subr.bf16.mxu1 %v3969_v23  ;;  %v204_v21 = vld [vmem:[#allocation5 + $0x4a0] sm:$0xff]  ;;  %v4640_v22 = vcombine.high %v4636_v15, %v4636_v15  ;;  %v205_v23 = vld [vmem:[#allocation5 + $0x4a8] sm:$0xff] }
  0x61   :  { %v4031_v26 = vcombine.high %v200_v20, %v204_v21  ;;  %v4033_v27 = vcombine.high %v201_v53, %v205_v23  ;;  %v4030_v32 = vcombine.low %v200_v20, %v204_v21  ;;  %v4032_v33 = vcombine.low %v201_v53, %v205_v23 }
  0x63   :  { %3219 = vmatpush1.bf16.msra.mxu0 %v3966_v28  ;;  %3383 = vmatpush1.bf16.msra.mxu1 %v3968_v29  ;;  %v208_v28 = vld [vmem:[#allocation5 + $0x4c0] sm:$0xff] }
  0x64   :  { %3220 = vmatprep.subr.bf16.mxu0 %v3975_v30  ;;  %3384 = vmatprep.subr.bf16.mxu1 %v3977_v31  ;;  %v212_v29 = vld [vmem:[#allocation5 + $0x4e0] sm:$0xff]  ;;  %v209_v30 = vld [vmem:[#allocation5 + $0x4c8] sm:$0xff] }
  0x65   :  { %v213_v31 = vld [vmem:[#allocation5 + $0x4e8] sm:$0xff]  ;;  %v4039_v34 = vcombine.high %v208_v28, %v212_v29  ;;  %v4038_v40 = vcombine.low %v208_v28, %v212_v29 }
  0x66   :  { %v4041_v35 = vcombine.high %v209_v30, %v213_v31  ;;  %v4040_v41 = vcombine.low %v209_v30, %v213_v31 }
  0x67   :  { %3221 = vmatpush1.bf16.msra.mxu0 %v3974_v36  ;;  %3385 = vmatpush1.bf16.msra.mxu1 %v3976_v37  ;;  %v216_v36 = vld [vmem:[#allocation5 + $0x500] sm:$0xff] }
  0x68   :  { %3222 = vmatprep.subr.bf16.mxu0 %v3983_v38  ;;  %3386 = vmatprep.subr.bf16.mxu1 %v3985_v39  ;;  %v220_v37 = vld [vmem:[#allocation5 + $0x520] sm:$0xff]  ;;  %v217_v38 = vld [vmem:[#allocation5 + $0x508] sm:$0xff] }
  0x69   :  { %v221_v39 = vld [vmem:[#allocation5 + $0x528] sm:$0xff]  ;;  %v4047_v42 = vcombine.high %v216_v36, %v220_v37  ;;  %v4046_v48 = vcombine.low %v216_v36, %v220_v37 }
  0x6a   :  { %v4049_v43 = vcombine.high %v217_v38, %v221_v39  ;;  %v4048_v49 = vcombine.low %v217_v38, %v221_v39 }
  0x6b   :  { %3223 = vmatpush1.bf16.msra.mxu0 %v3982_v44  ;;  %3387 = vmatpush1.bf16.msra.mxu1 %v3984_v45  ;;  %v224_v44 = vld [vmem:[#allocation5 + $0x540] sm:$0xff] }
  0x6c   :  { %3224 = vmatprep.subr.bf16.mxu0 %v3991_v46  ;;  %3388 = vmatprep.subr.bf16.mxu1 %v3993_v47  ;;  %v228_v45 = vld [vmem:[#allocation5 + $0x560] sm:$0xff]  ;;  %v225_v46 = vld [vmem:[#allocation5 + $0x548] sm:$0xff] }
  0x6d   :  { %v229_v47 = vld [vmem:[#allocation5 + $0x568] sm:$0xff]  ;;  %v4055_v50 = vcombine.high %v224_v44, %v228_v45  ;;  %v4054_v58 = vcombine.low %v224_v44, %v228_v45 }
  0x6e   :  { %v4057_v51 = vcombine.high %v225_v46, %v229_v47  ;;  %v4056_v59 = vcombine.low %v225_v46, %v229_v47 }
  0x6f   :  { %3225 = vmatpush1.bf16.msra.mxu0 %v3990_v52  ;;  %3389 = vmatpush1.bf16.msra.mxu1 %v3992_v54  ;;  %v232_v52 = vld [vmem:[#allocation5 + $0x580] sm:$0xff] }
  0x70   :  { %3226 = vmatprep.subr.bf16.mxu0 %v3999_v55  ;;  %3390 = vmatprep.subr.bf16.mxu1 %v4001_v56  ;;  %v236_v54 = vld [vmem:[#allocation5 + $0x5a0] sm:$0xff]  ;;  %v233_v55 = vld [vmem:[#allocation5 + $0x588] sm:$0xff] }
  0x71   :  { %v237_v56 = vld [vmem:[#allocation5 + $0x5a8] sm:$0xff]  ;;  %v4063_v60 = vcombine.high %v232_v52, %v236_v54  ;;  %v4062_v2 = vcombine.low %v232_v52, %v236_v54 }
  0x72   :  { %v4065_v61 = vcombine.high %v233_v55, %v237_v56  ;;  %v4064_v3 = vcombine.low %v233_v55, %v237_v56 }
  0x73   :  { %3227 = vmatpush1.bf16.msra.mxu0 %v3998_v62  ;;  %3391 = vmatpush1.bf16.msra.mxu1 %v4000_v63  ;;  %v240_v62 = vld [vmem:[#allocation5 + $0x5c0] sm:$0xff] }
  0x74   :  { %3228 = vmatprep.subr.bf16.mxu0 %v4007_v0  ;;  %3392 = vmatprep.subr.bf16.mxu1 %v4009_v1  ;;  %v244_v63 = vld [vmem:[#allocation5 + $0x5e0] sm:$0xff]  ;;  %v241_v0 = vld [vmem:[#allocation5 + $0x5c8] sm:$0xff] }
  0x75   :  { %v245_v1 = vld [vmem:[#allocation5 + $0x5e8] sm:$0xff]  ;;  %v4071_v4 = vcombine.high %v240_v62, %v244_v63  ;;  %v4070_v10 = vcombine.low %v240_v62, %v244_v63 }
  0x76   :  { %v4073_v5 = vcombine.high %v241_v0, %v245_v1  ;;  %v4072_v11 = vcombine.low %v241_v0, %v245_v1 }
  0x77   :  { %3229 = vmatpush1.bf16.msra.mxu0 %v4006_v6  ;;  %3393 = vmatpush1.bf16.msra.mxu1 %v4008_v7  ;;  %v248_v6 = vld [vmem:[#allocation5 + $0x600] sm:$0xff] }
  0x78   :  { %3239 = vmatprep.subr.bf16.mxu0 %v4015_v8  ;;  %3403 = vmatprep.subr.bf16.mxu1 %v4017_v9  ;;  %v252_v7 = vld [vmem:[#allocation5 + $0x620] sm:$0xff]  ;;  %v249_v8 = vld [vmem:[#allocation5 + $0x608] sm:$0xff] }
  0x79   :  { %v253_v9 = vld [vmem:[#allocation5 + $0x628] sm:$0xff]  ;;  %v4079_v13 = vcombine.high %v248_v6, %v252_v7  ;;  %v4078_v20 = vcombine.low %v248_v6, %v252_v7 }
  0x7a   :  { %3231 = vmatmul.mubr.bf16.vlgmr.msra.gmra.mrb[0].mxu0 %v4634_v12  ;;  %3395 = vmatmul.mubr.bf16.vlgmr.msra.gmra.mrb[0].mxu1 %v4634_v12  ;;  %v4081_v14 = vcombine.high %v249_v8, %v253_v9  ;;  %v4080_v21 = vcombine.low %v249_v8, %v253_v9 }
  0x7b   :  { %3240 = vmatpush1.bf16.msra.mxu0 %v4014_v16  ;;  %3404 = vmatpush1.bf16.msra.mxu1 %v4016_v17  ;;  %v256_v16 = vld [vmem:[#allocation5 + $0x640] sm:$0xff] }
  0x7c   :  { %3241 = vmatprep.subr.bf16.mxu0 %v4023_v18  ;;  %3405 = vmatprep.subr.bf16.mxu1 %v4025_v19  ;;  %v260_v17 = vld [vmem:[#allocation5 + $0x660] sm:$0xff]  ;;  %v257_v18 = vld [vmem:[#allocation5 + $0x648] sm:$0xff] }
  0x7d   :  { %3271 = vmatprep.mubr.bf16.mxu0 %v4640_v22  ;;  %3435 = vmatprep.mubr.bf16.mxu1 %v4640_v22  ;;  %v261_v19 = vld [vmem:[#allocation5 + $0x668] sm:$0xff]  ;;  %v4087_v53 = vcombine.high %v256_v16, %v260_v17  ;;  %v4086_v28 = vcombine.low %v256_v16, %v260_v17 }
  0x7e   :  { %v4089_v23 = vcombine.high %v257_v18, %v261_v19  ;;  %v4088_v29 = vcombine.low %v257_v18, %v261_v19 }
  0x7f   :  { %3242 = vmatpush1.bf16.msra.mxu0 %v4022_v24  ;;  %3406 = vmatpush1.bf16.msra.mxu1 %v4024_v25  ;;  %v264_v24 = vld [vmem:[#allocation5 + $0x680] sm:$0xff] }
  0x80   :  { %3243 = vmatprep.subr.bf16.mxu0 %v4031_v26  ;;  %3407 = vmatprep.subr.bf16.mxu1 %v4033_v27  ;;  %v268_v25 = vld [vmem:[#allocation5 + $0x6a0] sm:$0xff]  ;;  %v265_v26 = vld [vmem:[#allocation5 + $0x688] sm:$0xff] }
  0x81   :  { %v269_v27 = vld [vmem:[#allocation5 + $0x6a8] sm:$0xff]  ;;  %v4095_v30 = vcombine.high %v264_v24, %v268_v25  ;;  %v4094_v36 = vcombine.low %v264_v24, %v268_v25  ;;  %v4650_v25 = vld [vmem:[#allocation2 + $0x10] sm:$0xff] }
  0x82   :  { %v4097_v31 = vcombine.high %v265_v26, %v269_v27  ;;  %v4096_v37 = vcombine.low %v265_v26, %v269_v27  ;;  %v325_v24 = vld [vmem:[#allocation5 + $0x868] sm:$0xff] }
  0x83   :  { %3244 = vmatpush1.bf16.msra.mxu0 %v4030_v32  ;;  %3408 = vmatpush1.bf16.msra.mxu1 %v4032_v33  ;;  %v272_v32 = vld [vmem:[#allocation5 + $0x6c0] sm:$0xff] }
  0x84   :  { %3245 = vmatprep.subr.bf16.mxu0 %v4039_v34  ;;  %3409 = vmatprep.subr.bf16.mxu1 %v4041_v35  ;;  %v276_v33 = vld [vmem:[#allocation5 + $0x6e0] sm:$0xff]  ;;  %v273_v34 = vld [vmem:[#allocation5 + $0x6c8] sm:$0xff] }
  0x85   :  { %v277_v35 = vld [vmem:[#allocation5 + $0x6e8] sm:$0xff]  ;;  %v4103_v38 = vcombine.high %v272_v32, %v276_v33  ;;  %v4102_v44 = vcombine.low %v272_v32, %v276_v33  ;;  %v4654_v32 = vcombine.high %v4650_v25, %v4650_v25 }
  0x86   :  { %v4105_v39 = vcombine.high %v273_v34, %v277_v35  ;;  %v4104_v45 = vcombine.low %v273_v34, %v277_v35  ;;  %v333_v33 = vld [vmem:[#allocation5 + $0x8a8] sm:$0xff] }
  0x87   :  { %3246 = vmatpush1.bf16.msra.mxu0 %v4038_v40  ;;  %3410 = vmatpush1.bf16.msra.mxu1 %v4040_v41  ;;  %v280_v40 = vld [vmem:[#allocation5 + $0x700] sm:$0xff] }
  0x88   :  { %3247 = vmatprep.subr.bf16.mxu0 %v4047_v42  ;;  %3411 = vmatprep.subr.bf16.mxu1 %v4049_v43  ;;  %v284_v41 = vld [vmem:[#allocation5 + $0x720] sm:$0xff]  ;;  %v281_v42 = vld [vmem:[#allocation5 + $0x708] sm:$0xff] }
  0x89   :  { %v285_v43 = vld [vmem:[#allocation5 + $0x728] sm:$0xff]  ;;  %v4111_v46 = vcombine.high %v280_v40, %v284_v41  ;;  %v4110_v52 = vcombine.low %v280_v40, %v284_v41 }
  0x8a   :  { %v4113_v47 = vcombine.high %v281_v42, %v285_v43  ;;  %v4112_v54 = vcombine.low %v281_v42, %v285_v43  ;;  %v337_v40 = vld [vmem:[#allocation5 + $0x8c8] sm:$0xff] }
  0x8b   :  { %3248 = vmatpush1.bf16.msra.mxu0 %v4046_v48  ;;  %3412 = vmatpush1.bf16.msra.mxu1 %v4048_v49  ;;  %v288_v48 = vld [vmem:[#allocation5 + $0x740] sm:$0xff]  ;;  %v341_v41 = vld [vmem:[#allocation5 + $0x8e8] sm:$0xff] }
  0x8c   :  { %3249 = vmatprep.subr.bf16.mxu0 %v4055_v50  ;;  %3413 = vmatprep.subr.bf16.mxu1 %v4057_v51  ;;  %v292_v49 = vld [vmem:[#allocation5 + $0x760] sm:$0xff]  ;;  %v289_v50 = vld [vmem:[#allocation5 + $0x748] sm:$0xff] }
  0x8d   :  { %v293_v51 = vld [vmem:[#allocation5 + $0x768] sm:$0xff]  ;;  %v4119_v55 = vcombine.high %v288_v48, %v292_v49  ;;  %v4118_v62 = vcombine.low %v288_v48, %v292_v49 }
  0x8e   :  { %v4121_v56 = vcombine.high %v289_v50, %v293_v51  ;;  %v4120_v63 = vcombine.low %v289_v50, %v293_v51  ;;  %v345_v48 = vld [vmem:[#allocation5 + $0x908] sm:$0xff]  ;;  %v4168_v51 = vcombine.low %v337_v40, %v341_v41 }
  0x8f   :  { %3250 = vmatpush1.bf16.msra.mxu0 %v4054_v58  ;;  %3414 = vmatpush1.bf16.msra.mxu1 %v4056_v59  ;;  %v296_v58 = vld [vmem:[#allocation5 + $0x780] sm:$0xff]  ;;  %v349_v49 = vld [vmem:[#allocation5 + $0x928] sm:$0xff] }
  0x90   :  { %3251 = vmatprep.subr.bf16.mxu0 %v4063_v60  ;;  %3415 = vmatprep.subr.bf16.mxu1 %v4065_v61  ;;  %v300_v59 = vld [vmem:[#allocation5 + $0x7a0] sm:$0xff]  ;;  %v297_v60 = vld [vmem:[#allocation5 + $0x788] sm:$0xff] }
  0x91   :  { %v301_v61 = vld [vmem:[#allocation5 + $0x7a8] sm:$0xff]  ;;  %v4127_v0 = vcombine.high %v296_v58, %v300_v59  ;;  %v4126_v6 = vcombine.low %v296_v58, %v300_v59 }
  0x92   :  { %v4129_v1 = vcombine.high %v297_v60, %v301_v61  ;;  %v4128_v7 = vcombine.low %v297_v60, %v301_v61  ;;  %v353_v58 = vld [vmem:[#allocation5 + $0x948] sm:$0xff]  ;;  %v4176_v61 = vcombine.low %v345_v48, %v349_v49 }
  0x93   :  { %3252 = vmatpush1.bf16.msra.mxu0 %v4062_v2  ;;  %3416 = vmatpush1.bf16.msra.mxu1 %v4064_v3  ;;  %v304_v2 = vld [vmem:[#allocation5 + $0x7c0] sm:$0xff]  ;;  %v357_v59 = vld [vmem:[#allocation5 + $0x968] sm:$0xff] }
  0x94   :  { %3253 = vmatprep.subr.bf16.mxu0 %v4071_v4  ;;  %3417 = vmatprep.subr.bf16.mxu1 %v4073_v5  ;;  %v308_v3 = vld [vmem:[#allocation5 + $0x7e0] sm:$0xff]  ;;  %v305_v4 = vld [vmem:[#allocation5 + $0x7c8] sm:$0xff] }
  0x95   :  { %v309_v5 = vld [vmem:[#allocation5 + $0x7e8] sm:$0xff]  ;;  %v4135_v8 = vcombine.high %v304_v2, %v308_v3  ;;  %v4134_v16 = vcombine.low %v304_v2, %v308_v3 }
  0x96   :  { %v4137_v9 = vcombine.high %v305_v4, %v309_v5  ;;  %v4136_v17 = vcombine.low %v305_v4, %v309_v5  ;;  %v361_v2 = vld [vmem:[#allocation5 + $0x988] sm:$0xff]  ;;  %v4184_v5 = vcombine.low %v353_v58, %v357_v59 }
  0x97   :  { %3254 = vmatpush1.bf16.msra.mxu0 %v4070_v10  ;;  %3418 = vmatpush1.bf16.msra.mxu1 %v4072_v11  ;;  %v312_v10 = vld [vmem:[#allocation5 + $0x800] sm:$0xff]  ;;  %v365_v3 = vld [vmem:[#allocation5 + $0x9a8] sm:$0xff] }
  0x98   :  { %3255 = vmatprep.subr.bf16.mxu0 %v4079_v13  ;;  %3419 = vmatprep.subr.bf16.mxu1 %v4081_v14  ;;  %v316_v11 = vld [vmem:[#allocation5 + $0x820] sm:$0xff]  ;;  %v313_v13 = vld [vmem:[#allocation5 + $0x808] sm:$0xff] }
  0x99   :  { %v317_v14 = vld [vmem:[#allocation5 + $0x828] sm:$0xff]  ;;  %v4143_v18 = vcombine.high %v312_v10, %v316_v11  ;;  %v4142_v26 = vcombine.low %v312_v10, %v316_v11 }
  0x9a   :  { %v4145_v19 = vcombine.high %v313_v13, %v317_v14  ;;  %v4144_v27 = vcombine.low %v313_v13, %v317_v14  ;;  %v369_v10 = vld [vmem:[#allocation5 + $0x9c8] sm:$0xff]  ;;  %v4192_v14 = vcombine.low %v361_v2, %v365_v3 }
  0x9b   :  { %3256 = vmatpush1.bf16.msra.mxu0 %v4078_v20  ;;  %3420 = vmatpush1.bf16.msra.mxu1 %v4080_v21  ;;  %v320_v20 = vld [vmem:[#allocation5 + $0x840] sm:$0xff]  ;;  %v373_v11 = vld [vmem:[#allocation5 + $0x9e8] sm:$0xff] }
  0x9c   :  { %3257 = vmatprep.subr.bf16.mxu0 %v4087_v53  ;;  %3421 = vmatprep.subr.bf16.mxu1 %v4089_v23  ;;  %v324_v21 = vld [vmem:[#allocation5 + $0x860] sm:$0xff]  ;;  %v4648_v53 = vcombine.low %v4636_v15, %v4636_v15  ;;  %v321_v23 = vld [vmem:[#allocation5 + $0x848] sm:$0xff] }
  0x9d   :  { %v329_v15 = vld [vmem:[#allocation5 + $0x888] sm:$0xff]  ;;  %v4150_v34 = vcombine.low %v320_v20, %v324_v21  ;;  %v4152_v35 = vcombine.low %v321_v23, %v325_v24 }
  0x9e   :  { %v4160_v43 = vcombine.low %v329_v15, %v333_v33 }
  0x9f   :  { %3258 = vmatpush1.bf16.msra.mxu0 %v4086_v28  ;;  %3422 = vmatpush1.bf16.msra.mxu1 %v4088_v29  ;;  %v4151_v28 = vcombine.high %v320_v20, %v324_v21  ;;  %v4153_v29 = vcombine.high %v321_v23, %v325_v24  ;;  %v377_v20 = vld [vmem:[#allocation5 + $0xa08] sm:$0xff]  ;;  %v4200_v24 = vcombine.low %v369_v10, %v373_v11 }
  0xa0   :  { %3259 = vmatprep.subr.bf16.mxu0 %v4095_v30  ;;  %3423 = vmatprep.subr.bf16.mxu1 %v4097_v31  ;;  %v328_v30 = vld [vmem:[#allocation5 + $0x880] sm:$0xff]  ;;  %v381_v21 = vld [vmem:[#allocation5 + $0xa28] sm:$0xff] }
  0xa1   :  { %v332_v31 = vld [vmem:[#allocation5 + $0x8a0] sm:$0xff] }
  0xa2   :  { %v4158_v42 = vcombine.low %v328_v30, %v332_v31 }
  0xa3   :  { %3260 = vmatpush1.bf16.msra.mxu0 %v4094_v36  ;;  %3424 = vmatpush1.bf16.msra.mxu1 %v4096_v37  ;;  %v4159_v36 = vcombine.high %v328_v30, %v332_v31  ;;  %v4161_v37 = vcombine.high %v329_v15, %v333_v33  ;;  %v385_v30 = vld [vmem:[#allocation5 + $0xa48] sm:$0xff]  ;;  %v4208_v33 = vcombine.low %v377_v20, %v381_v21 }
  0xa4   :  { %3261 = vmatprep.subr.bf16.mxu0 %v4103_v38  ;;  %3425 = vmatprep.subr.bf16.mxu1 %v4105_v39  ;;  %v336_v38 = vld [vmem:[#allocation5 + $0x8c0] sm:$0xff]  ;;  %v389_v31 = vld [vmem:[#allocation5 + $0xa68] sm:$0xff] }
  0xa5   :  { %v340_v39 = vld [vmem:[#allocation5 + $0x8e0] sm:$0xff] }
  0xa6   :  { %v4166_v50 = vcombine.low %v336_v38, %v340_v39 }
  0xa7   :  { %3262 = vmatpush1.bf16.msra.mxu0 %v4102_v44  ;;  %3426 = vmatpush1.bf16.msra.mxu1 %v4104_v45  ;;  %v4167_v44 = vcombine.high %v336_v38, %v340_v39  ;;  %v4169_v45 = vcombine.high %v337_v40, %v341_v41  ;;  %v393_v38 = vld [vmem:[#allocation5 + $0xa88] sm:$0xff]  ;;  %v4216_v41 = vcombine.low %v385_v30, %v389_v31 }
  0xa8   :  { %3263 = vmatprep.subr.bf16.mxu0 %v4111_v46  ;;  %3427 = vmatprep.subr.bf16.mxu1 %v4113_v47  ;;  %v344_v46 = vld [vmem:[#allocation5 + $0x900] sm:$0xff]  ;;  %v397_v39 = vld [vmem:[#allocation5 + $0xaa8] sm:$0xff] }
  0xa9   :  { %v348_v47 = vld [vmem:[#allocation5 + $0x920] sm:$0xff] }
  0xaa   :  { %v4174_v60 = vcombine.low %v344_v46, %v348_v47 }
  0xab   :  { %3264 = vmatpush1.bf16.msra.mxu0 %v4110_v52  ;;  %3428 = vmatpush1.bf16.msra.mxu1 %v4112_v54  ;;  %v4175_v52 = vcombine.high %v344_v46, %v348_v47  ;;  %v4177_v54 = vcombine.high %v345_v48, %v349_v49  ;;  %v401_v46 = vld [vmem:[#allocation5 + $0xac8] sm:$0xff]  ;;  %v4224_v49 = vcombine.low %v393_v38, %v397_v39 }
  0xac   :  { %3265 = vmatprep.subr.bf16.mxu0 %v4119_v55  ;;  %3429 = vmatprep.subr.bf16.mxu1 %v4121_v56  ;;  %v352_v55 = vld [vmem:[#allocation5 + $0x940] sm:$0xff]  ;;  %v405_v47 = vld [vmem:[#allocation5 + $0xae8] sm:$0xff] }
  0xad   :  { %v356_v56 = vld [vmem:[#allocation5 + $0x960] sm:$0xff] }
  0xae   :  { %v4182_v4 = vcombine.low %v352_v55, %v356_v56 }
  0xaf   :  { %3266 = vmatpush1.bf16.msra.mxu0 %v4118_v62  ;;  %3430 = vmatpush1.bf16.msra.mxu1 %v4120_v63  ;;  %v4183_v62 = vcombine.high %v352_v55, %v356_v56  ;;  %v4185_v63 = vcombine.high %v353_v58, %v357_v59  ;;  %v409_v55 = vld [vmem:[#allocation5 + $0xb08] sm:$0xff]  ;;  %v4232_v59 = vcombine.low %v401_v46, %v405_v47 }
  0xb0   :  { %3267 = vmatprep.subr.bf16.mxu0 %v4127_v0  ;;  %3431 = vmatprep.subr.bf16.mxu1 %v4129_v1  ;;  %v360_v0 = vld [vmem:[#allocation5 + $0x980] sm:$0xff]  ;;  %v413_v56 = vld [vmem:[#allocation5 + $0xb28] sm:$0xff] }
  0xb1   :  { %v364_v1 = vld [vmem:[#allocation5 + $0x9a0] sm:$0xff] }
  0xb2   :  { %v4190_v13 = vcombine.low %v360_v0, %v364_v1 }
  0xb3   :  { %3268 = vmatpush1.bf16.msra.mxu0 %v4126_v6  ;;  %3432 = vmatpush1.bf16.msra.mxu1 %v4128_v7  ;;  %v4191_v6 = vcombine.high %v360_v0, %v364_v1  ;;  %v4193_v7 = vcombine.high %v361_v2, %v365_v3  ;;  %v417_v0 = vld [vmem:[#allocation5 + $0xb48] sm:$0xff]  ;;  %v4240_v3 = vcombine.low %v409_v55, %v413_v56 }
  0xb4   :  { %3269 = vmatprep.subr.bf16.mxu0 %v4135_v8  ;;  %3433 = vmatprep.subr.bf16.mxu1 %v4137_v9  ;;  %v368_v8 = vld [vmem:[#allocation5 + $0x9c0] sm:$0xff]  ;;  %v421_v1 = vld [vmem:[#allocation5 + $0xb68] sm:$0xff] }
  0xb5   :  { %v372_v9 = vld [vmem:[#allocation5 + $0x9e0] sm:$0xff] }
  0xb6   :  { %v4198_v23 = vcombine.low %v368_v8, %v372_v9 }
  0xb7   :  { %3270 = vmatpush1.bf16.msra.mxu0 %v4134_v16  ;;  %3434 = vmatpush1.bf16.msra.mxu1 %v4136_v17  ;;  %v4199_v16 = vcombine.high %v368_v8, %v372_v9  ;;  %v4201_v17 = vcombine.high %v369_v10, %v373_v11  ;;  %v425_v8 = vld [vmem:[#allocation5 + $0xb88] sm:$0xff]  ;;  %v4248_v11 = vcombine.low %v417_v0, %v421_v1 }
  0xb8   :  { %3280 = vmatprep.subr.bf16.mxu0 %v4143_v18  ;;  %3444 = vmatprep.subr.bf16.mxu1 %v4145_v19  ;;  %v376_v18 = vld [vmem:[#allocation5 + $0xa00] sm:$0xff]  ;;  %v429_v9 = vld [vmem:[#allocation5 + $0xba8] sm:$0xff] }
  0xb9   :  { %v380_v19 = vld [vmem:[#allocation5 + $0xa20] sm:$0xff] }
  0xba   :  { %3272 = vmatmul.mubr.bf16.vlgmr.msra.gmra.mrb[0].mxu0 %v4648_v53  ;;  %3436 = vmatmul.mubr.bf16.vlgmr.msra.gmra.mrb[0].mxu1 %v4648_v53  ;;  %v4206_v15 = vcombine.low %v376_v18, %v380_v19 }
  0xbb   :  { %3281 = vmatpush1.bf16.msra.mxu0 %v4142_v26  ;;  %3445 = vmatpush1.bf16.msra.mxu1 %v4144_v27  ;;  %v4207_v26 = vcombine.high %v376_v18, %v380_v19  ;;  %v4209_v27 = vcombine.high %v377_v20, %v381_v21  ;;  %v433_v18 = vld [vmem:[#allocation5 + $0xbc8] sm:$0xff]  ;;  %v4256_v21 = vcombine.low %v425_v8, %v429_v9 }
  0xbc   :  { %3282 = vmatprep.subr.bf16.mxu0 %v4151_v28  ;;  %3446 = vmatprep.subr.bf16.mxu1 %v4153_v29  ;;  %v384_v28 = vld [vmem:[#allocation5 + $0xa40] sm:$0xff]  ;;  %v437_v19 = vld [vmem:[#allocation5 + $0xbe8] sm:$0xff] }
  0xbd   :  { %3312 = vmatprep.mubr.bf16.mxu0 %v4654_v32  ;;  %3476 = vmatprep.mubr.bf16.mxu1 %v4654_v32  ;;  %v388_v29 = vld [vmem:[#allocation5 + $0xa60] sm:$0xff] }
  0xbe   :  { %v4214_v40 = vcombine.low %v384_v28, %v388_v29 }
  0xbf   :  { %3283 = vmatpush1.bf16.msra.mxu0 %v4150_v34  ;;  %3447 = vmatpush1.bf16.msra.mxu1 %v4152_v35  ;;  %v4215_v34 = vcombine.high %v384_v28, %v388_v29  ;;  %v4217_v35 = vcombine.high %v385_v30, %v389_v31  ;;  %v441_v28 = vld [vmem:[#allocation5 + $0xc08] sm:$0xff]  ;;  %v4264_v31 = vcombine.low %v433_v18, %v437_v19 }
  0xc0   :  { %3284 = vmatprep.subr.bf16.mxu0 %v4159_v36  ;;  %3448 = vmatprep.subr.bf16.mxu1 %v4161_v37  ;;  %v392_v36 = vld [vmem:[#allocation5 + $0xa80] sm:$0xff]  ;;  %v445_v29 = vld [vmem:[#allocation5 + $0xc28] sm:$0xff] }
  0xc1   :  { %v396_v37 = vld [vmem:[#allocation5 + $0xaa0] sm:$0xff] }
  0xc2   :  { %v4222_v48 = vcombine.low %v392_v36, %v396_v37 }
  0xc3   :  { %3285 = vmatpush1.bf16.msra.mxu0 %v4158_v42  ;;  %3449 = vmatpush1.bf16.msra.mxu1 %v4160_v43  ;;  %v4223_v42 = vcombine.high %v392_v36, %v396_v37  ;;  %v4225_v43 = vcombine.high %v393_v38, %v397_v39  ;;  %v4662_v36 = vcombine.low %v4650_v25, %v4650_v25  ;;  %v449_v37 = vld [vmem:[#allocation5 + $0xc48] sm:$0xff]  ;;  %v4664_v39 = vld [vmem:[#allocation2 + $0x18] sm:$0xff] }
  0xc4   :  { %3286 = vmatprep.subr.bf16.mxu0 %v4167_v44  ;;  %3450 = vmatprep.subr.bf16.mxu1 %v4169_v45  ;;  %v400_v44 = vld [vmem:[#allocation5 + $0xac0] sm:$0xff]  ;;  %v453_v38 = vld [vmem:[#allocation5 + $0xc68] sm:$0xff] }
  0xc5   :  { %v404_v45 = vld [vmem:[#allocation5 + $0xae0] sm:$0xff]  ;;  %v457_v25 = vld [vmem:[#allocation5 + $0xc88] sm:$0xff] }
  0xc6   :  { %v4230_v58 = vcombine.low %v400_v44, %v404_v45 }
  0xc7   :  { %3287 = vmatpush1.bf16.msra.mxu0 %v4166_v50  ;;  %3451 = vmatpush1.bf16.msra.mxu1 %v4168_v51  ;;  %v4231_v50 = vcombine.high %v400_v44, %v404_v45  ;;  %v4233_v51 = vcombine.high %v401_v46, %v405_v47  ;;  %v456_v44 = vld [vmem:[#allocation5 + $0xc80] sm:$0xff]  ;;  %v4668_v46 = vcombine.high %v4664_v39, %v4664_v39  ;;  %v461_v47 = vld [vmem:[#allocation5 + $0xca8] sm:$0xff] }
  0xc8   :  { %3288 = vmatprep.subr.bf16.mxu0 %v4175_v52  ;;  %3452 = vmatprep.subr.bf16.mxu1 %v4177_v54  ;;  %v408_v52 = vld [vmem:[#allocation5 + $0xb00] sm:$0xff] }
  0xc9   :  { %v412_v54 = vld [vmem:[#allocation5 + $0xb20] sm:$0xff] }
  0xca   :  { %v4238_v2 = vcombine.low %v408_v52, %v412_v54  ;;  %v460_v45 = vld [vmem:[#allocation5 + $0xca0] sm:$0xff] }
  0xcb   :  { %3289 = vmatpush1.bf16.msra.mxu0 %v4174_v60  ;;  %3453 = vmatpush1.bf16.msra.mxu1 %v4176_v61  ;;  %v4239_v60 = vcombine.high %v408_v52, %v412_v54  ;;  %v4241_v61 = vcombine.high %v409_v55, %v413_v56  ;;  %v464_v52 = vld [vmem:[#allocation5 + $0xcc0] sm:$0xff]  ;;  %v465_v55 = vld [vmem:[#allocation5 + $0xcc8] sm:$0xff] }
  0xcc   :  { %3290 = vmatprep.subr.bf16.mxu0 %v4183_v62  ;;  %3454 = vmatprep.subr.bf16.mxu1 %v4185_v63  ;;  %v416_v62 = vld [vmem:[#allocation5 + $0xb40] sm:$0xff]  ;;  %v469_v56 = vld [vmem:[#allocation5 + $0xce8] sm:$0xff] }
  0xcd   :  { %v420_v63 = vld [vmem:[#allocation5 + $0xb60] sm:$0xff] }
  0xce   :  { %v4246_v10 = vcombine.low %v416_v62, %v420_v63  ;;  %v468_v54 = vld [vmem:[#allocation5 + $0xce0] sm:$0xff] }
  0xcf   :  { %3291 = vmatpush1.bf16.msra.mxu0 %v4182_v4  ;;  %3455 = vmatpush1.bf16.msra.mxu1 %v4184_v5  ;;  %v4247_v4 = vcombine.high %v416_v62, %v420_v63  ;;  %v4249_v5 = vcombine.high %v417_v0, %v421_v1  ;;  %v472_v62 = vld [vmem:[#allocation5 + $0xd00] sm:$0xff]  ;;  %v473_v0 = vld [vmem:[#allocation5 + $0xd08] sm:$0xff] }
  0xd0   :  { %3292 = vmatprep.subr.bf16.mxu0 %v4191_v6  ;;  %3456 = vmatprep.subr.bf16.mxu1 %v4193_v7  ;;  %v424_v6 = vld [vmem:[#allocation5 + $0xb80] sm:$0xff]  ;;  %v477_v1 = vld [vmem:[#allocation5 + $0xd28] sm:$0xff] }
  0xd1   :  { %v428_v7 = vld [vmem:[#allocation5 + $0xba0] sm:$0xff] }
  0xd2   :  { %v4254_v20 = vcombine.low %v424_v6, %v428_v7  ;;  %v476_v63 = vld [vmem:[#allocation5 + $0xd20] sm:$0xff] }
  0xd3   :  { %3293 = vmatpush1.bf16.msra.mxu0 %v4190_v13  ;;  %3457 = vmatpush1.bf16.msra.mxu1 %v4192_v14  ;;  %v4255_v13 = vcombine.high %v424_v6, %v428_v7  ;;  %v4257_v14 = vcombine.high %v425_v8, %v429_v9  ;;  %v480_v6 = vld [vmem:[#allocation5 + $0xd40] sm:$0xff]  ;;  %v481_v8 = vld [vmem:[#allocation5 + $0xd48] sm:$0xff] }
  0xd4   :  { %3294 = vmatprep.subr.bf16.mxu0 %v4199_v16  ;;  %3458 = vmatprep.subr.bf16.mxu1 %v4201_v17  ;;  %v432_v16 = vld [vmem:[#allocation5 + $0xbc0] sm:$0xff]  ;;  %v485_v9 = vld [vmem:[#allocation5 + $0xd68] sm:$0xff] }
  0xd5   :  { %v436_v17 = vld [vmem:[#allocation5 + $0xbe0] sm:$0xff] }
  0xd6   :  { %v4262_v30 = vcombine.low %v432_v16, %v436_v17  ;;  %v484_v7 = vld [vmem:[#allocation5 + $0xd60] sm:$0xff] }
  0xd7   :  { %3295 = vmatpush1.bf16.msra.mxu0 %v4198_v23  ;;  %3459 = vmatpush1.bf16.msra.mxu1 %v4200_v24  ;;  %v4263_v23 = vcombine.high %v432_v16, %v436_v17  ;;  %v4265_v24 = vcombine.high %v433_v18, %v437_v19  ;;  %v488_v16 = vld [vmem:[#allocation5 + $0xd80] sm:$0xff]  ;;  %v489_v18 = vld [vmem:[#allocation5 + $0xd88] sm:$0xff] }
  0xd8   :  { %3296 = vmatprep.subr.bf16.mxu0 %v4207_v26  ;;  %3460 = vmatprep.subr.bf16.mxu1 %v4209_v27  ;;  %v440_v26 = vld [vmem:[#allocation5 + $0xc00] sm:$0xff]  ;;  %v493_v19 = vld [vmem:[#allocation5 + $0xda8] sm:$0xff] }
  0xd9   :  { %v444_v27 = vld [vmem:[#allocation5 + $0xc20] sm:$0xff] }
  0xda   :  { %v492_v17 = vld [vmem:[#allocation5 + $0xda0] sm:$0xff] }
  0xdb   :  { %3297 = vmatpush1.bf16.msra.mxu0 %v4206_v15  ;;  %3461 = vmatpush1.bf16.msra.mxu1 %v4208_v33  ;;  %v4271_v15 = vcombine.high %v440_v26, %v444_v27  ;;  %v4273_v33 = vcombine.high %v441_v28, %v445_v29 }
  0xdc   :  { %3298 = vmatprep.subr.bf16.mxu0 %v4215_v34  ;;  %3462 = vmatprep.subr.bf16.mxu1 %v4217_v35  ;;  %v448_v34 = vld [vmem:[#allocation5 + $0xc40] sm:$0xff] }
  0xdd   :  { %v452_v35 = vld [vmem:[#allocation5 + $0xc60] sm:$0xff] }
  0xdf   :  { %3299 = vmatpush1.bf16.msra.mxu0 %v4214_v40  ;;  %3463 = vmatpush1.bf16.msra.mxu1 %v4216_v41  ;;  %v4270_v40 = vcombine.low %v440_v26, %v444_v27  ;;  %v4272_v41 = vcombine.low %v441_v28, %v445_v29  ;;  %v496_v26 = vld [vmem:[#allocation5 + $0xdc0] sm:$0xff]  ;;  %v497_v28 = vld [vmem:[#allocation5 + $0xdc8] sm:$0xff] }
  0xe0   :  { %3300 = vmatprep.subr.bf16.mxu0 %v4223_v42  ;;  %3464 = vmatprep.subr.bf16.mxu1 %v4225_v43  ;;  %v4279_v42 = vcombine.high %v448_v34, %v452_v35  ;;  %v4281_v43 = vcombine.high %v449_v37, %v453_v38  ;;  %v500_v27 = vld [vmem:[#allocation5 + $0xde0] sm:$0xff]  ;;  %v501_v29 = vld [vmem:[#allocation5 + $0xde8] sm:$0xff] }
  0xe3   :  { %3301 = vmatpush1.bf16.msra.mxu0 %v4222_v48  ;;  %3465 = vmatpush1.bf16.msra.mxu1 %v4224_v49  ;;  %v4278_v48 = vcombine.low %v448_v34, %v452_v35  ;;  %v4280_v49 = vcombine.low %v449_v37, %v453_v38  ;;  %v504_v34 = vld [vmem:[#allocation5 + $0xe00] sm:$0xff]  ;;  %v505_v37 = vld [vmem:[#allocation5 + $0xe08] sm:$0xff] }
  0xe4   :  { %3302 = vmatprep.subr.bf16.mxu0 %v4231_v50  ;;  %3466 = vmatprep.subr.bf16.mxu1 %v4233_v51  ;;  %v4287_v50 = vcombine.high %v456_v44, %v460_v45  ;;  %v4289_v51 = vcombine.high %v457_v25, %v461_v47  ;;  %v508_v35 = vld [vmem:[#allocation5 + $0xe20] sm:$0xff]  ;;  %v509_v38 = vld [vmem:[#allocation5 + $0xe28] sm:$0xff] }
  0xe7   :  { %3303 = vmatpush1.bf16.msra.mxu0 %v4230_v58  ;;  %3467 = vmatpush1.bf16.msra.mxu1 %v4232_v59  ;;  %v4286_v58 = vcombine.low %v456_v44, %v460_v45  ;;  %v4288_v59 = vcombine.low %v457_v25, %v461_v47  ;;  %v512_v44 = vld [vmem:[#allocation5 + $0xe40] sm:$0xff]  ;;  %v513_v25 = vld [vmem:[#allocation5 + $0xe48] sm:$0xff] }
  0xe8   :  { %3304 = vmatprep.subr.bf16.mxu0 %v4239_v60  ;;  %3468 = vmatprep.subr.bf16.mxu1 %v4241_v61  ;;  %v4295_v60 = vcombine.high %v464_v52, %v468_v54  ;;  %v4297_v61 = vcombine.high %v465_v55, %v469_v56  ;;  %v516_v45 = vld [vmem:[#allocation5 + $0xe60] sm:$0xff]  ;;  %v517_v47 = vld [vmem:[#allocation5 + $0xe68] sm:$0xff] }
  0xeb   :  { %3305 = vmatpush1.bf16.msra.mxu0 %v4238_v2  ;;  %3469 = vmatpush1.bf16.msra.mxu1 %v4240_v3  ;;  %v4294_v2 = vcombine.low %v464_v52, %v468_v54  ;;  %v4296_v3 = vcombine.low %v465_v55, %v469_v56  ;;  %v520_v52 = vld [vmem:[#allocation5 + $0xe80] sm:$0xff]  ;;  %v521_v55 = vld [vmem:[#allocation5 + $0xe88] sm:$0xff] }
  0xec   :  { %3306 = vmatprep.subr.bf16.mxu0 %v4247_v4  ;;  %3470 = vmatprep.subr.bf16.mxu1 %v4249_v5  ;;  %v4303_v4 = vcombine.high %v472_v62, %v476_v63  ;;  %v4305_v5 = vcombine.high %v473_v0, %v477_v1  ;;  %v524_v54 = vld [vmem:[#allocation5 + $0xea0] sm:$0xff]  ;;  %v525_v56 = vld [vmem:[#allocation5 + $0xea8] sm:$0xff] }
  0xef   :  { %3307 = vmatpush1.bf16.msra.mxu0 %v4246_v10  ;;  %3471 = vmatpush1.bf16.msra.mxu1 %v4248_v11  ;;  %v4302_v10 = vcombine.low %v472_v62, %v476_v63  ;;  %v4304_v11 = vcombine.low %v473_v0, %v477_v1  ;;  %v528_v62 = vld [vmem:[#allocation5 + $0xec0] sm:$0xff]  ;;  %v529_v0 = vld [vmem:[#allocation5 + $0xec8] sm:$0xff] }
  0xf0   :  { %3308 = vmatprep.subr.bf16.mxu0 %v4255_v13  ;;  %3472 = vmatprep.subr.bf16.mxu1 %v4257_v14  ;;  %v4311_v13 = vcombine.high %v480_v6, %v484_v7  ;;  %v4313_v14 = vcombine.high %v481_v8, %v485_v9  ;;  %v532_v63 = vld [vmem:[#allocation5 + $0xee0] sm:$0xff]  ;;  %v533_v1 = vld [vmem:[#allocation5 + $0xee8] sm:$0xff] }
  0xf3   :  { %3309 = vmatpush1.bf16.msra.mxu0 %v4254_v20  ;;  %3473 = vmatpush1.bf16.msra.mxu1 %v4256_v21  ;;  %v4310_v20 = vcombine.low %v480_v6, %v484_v7  ;;  %v4312_v21 = vcombine.low %v481_v8, %v485_v9  ;;  %v536_v6 = vld [vmem:[#allocation5 + $0xf00] sm:$0xff]  ;;  %v537_v8 = vld [vmem:[#allocation5 + $0xf08] sm:$0xff] }
  0xf4   :  { %3310 = vmatprep.subr.bf16.mxu0 %v4263_v23  ;;  %3474 = vmatprep.subr.bf16.mxu1 %v4265_v24  ;;  %v4319_v23 = vcombine.high %v488_v16, %v492_v17  ;;  %v4321_v24 = vcombine.high %v489_v18, %v493_v19  ;;  %v540_v7 = vld [vmem:[#allocation5 + $0xf20] sm:$0xff]  ;;  %v541_v9 = vld [vmem:[#allocation5 + $0xf28] sm:$0xff] }
  0xf7   :  { %3311 = vmatpush1.bf16.msra.mxu0 %v4262_v30  ;;  %3475 = vmatpush1.bf16.msra.mxu1 %v4264_v31  ;;  %v4318_v30 = vcombine.low %v488_v16, %v492_v17  ;;  %v4320_v31 = vcombine.low %v489_v18, %v493_v19  ;;  %v544_v16 = vld [vmem:[#allocation5 + $0xf40] sm:$0xff]  ;;  %v545_v18 = vld [vmem:[#allocation5 + $0xf48] sm:$0xff] }
  0xf8   :  { %3321 = vmatprep.subr.bf16.mxu0 %v4271_v15  ;;  %3485 = vmatprep.subr.bf16.mxu1 %v4273_v33  ;;  %v4327_v15 = vcombine.high %v496_v26, %v500_v27  ;;  %v4329_v33 = vcombine.high %v497_v28, %v501_v29  ;;  %v548_v17 = vld [vmem:[#allocation5 + $0xf60] sm:$0xff]  ;;  %v549_v19 = vld [vmem:[#allocation5 + $0xf68] sm:$0xff] }
  0xfa   :  { %3313 = vmatmul.mubr.bf16.vlgmr.msra.gmra.mrb[0].mxu0 %v4662_v36  ;;  %3477 = vmatmul.mubr.bf16.vlgmr.msra.gmra.mrb[0].mxu1 %v4662_v36 }
  0xfb   :  { %3322 = vmatpush1.bf16.msra.mxu0 %v4270_v40  ;;  %3486 = vmatpush1.bf16.msra.mxu1 %v4272_v41  ;;  %v4326_v40 = vcombine.low %v496_v26, %v500_v27  ;;  %v4328_v41 = vcombine.low %v497_v28, %v501_v29  ;;  %v552_v26 = vld [vmem:[#allocation5 + $0xf80] sm:$0xff]  ;;  %v553_v28 = vld [vmem:[#allocation5 + $0xf88] sm:$0xff] }
  0xfc   :  { %3323 = vmatprep.subr.bf16.mxu0 %v4279_v42  ;;  %3487 = vmatprep.subr.bf16.mxu1 %v4281_v43  ;;  %v4335_v42 = vcombine.high %v504_v34, %v508_v35  ;;  %v4337_v43 = vcombine.high %v505_v37, %v509_v38  ;;  %v556_v27 = vld [vmem:[#allocation5 + $0xfa0] sm:$0xff]  ;;  %v557_v29 = vld [vmem:[#allocation5 + $0xfa8] sm:$0xff] }
  0xfd   :  { %3353 = vmatprep.mubr.bf16.mxu0 %v4668_v46  ;;  %3517 = vmatprep.mubr.bf16.mxu1 %v4668_v46 }
  0xff   :  { %3324 = vmatpush1.bf16.msra.mxu0 %v4278_v48  ;;  %3488 = vmatpush1.bf16.msra.mxu1 %v4280_v49  ;;  %v4334_v48 = vcombine.low %v504_v34, %v508_v35  ;;  %v4336_v49 = vcombine.low %v505_v37, %v509_v38  ;;  %v560_v34 = vld [vmem:[#allocation5 + $0xfc0] sm:$0xff]  ;;  %v561_v37 = vld [vmem:[#allocation5 + $0xfc8] sm:$0xff] }
 0x100   :  { %3325 = vmatprep.subr.bf16.mxu0 %v4287_v50  ;;  %3489 = vmatprep.subr.bf16.mxu1 %v4289_v51  ;;  %v4343_v50 = vcombine.high %v512_v44, %v516_v45  ;;  %v4345_v51 = vcombine.high %v513_v25, %v517_v47  ;;  %v564_v35 = vld [vmem:[#allocation5 + $0xfe0] sm:$0xff]  ;;  %v565_v38 = vld [vmem:[#allocation5 + $0xfe8] sm:$0xff] }
 0x103   :  { %3326 = vmatpush1.bf16.msra.mxu0 %v4286_v58  ;;  %3490 = vmatpush1.bf16.msra.mxu1 %v4288_v59  ;;  %v4342_v58 = vcombine.low %v512_v44, %v516_v45  ;;  %v4344_v59 = vcombine.low %v513_v25, %v517_v47  ;;  %v58_v44 = vld [vmem:[#allocation5 + $0x10] sm:$0xff]  ;;  %v59_v25 = vld [vmem:[#allocation5 + $0x18] sm:$0xff] }
 0x104   :  { %3327 = vmatprep.subr.bf16.mxu0 %v4295_v60  ;;  %3491 = vmatprep.subr.bf16.mxu1 %v4297_v61  ;;  %v4351_v60 = vcombine.high %v520_v52, %v524_v54  ;;  %v4353_v61 = vcombine.high %v521_v55, %v525_v56  ;;  %v62_v45 = vld [vmem:[#allocation5 + $0x30] sm:$0xff]  ;;  %v63_v47 = vld [vmem:[#allocation5 + $0x38] sm:$0xff] }
 0x107   :  { %3328 = vmatpush1.bf16.msra.mxu0 %v4294_v2  ;;  %3492 = vmatpush1.bf16.msra.mxu1 %v4296_v3  ;;  %v4350_v2 = vcombine.low %v520_v52, %v524_v54  ;;  %v4352_v3 = vcombine.low %v521_v55, %v525_v56  ;;  %v66_v52 = vld [vmem:[#allocation5 + $0x50] sm:$0xff]  ;;  %v4676_v55 = vcombine.low %v4664_v39, %v4664_v39  ;;  %v67_v56 = vld [vmem:[#allocation5 + $0x58] sm:$0xff] }
 0x108   :  { %3329 = vmatprep.subr.bf16.mxu0 %v4303_v4  ;;  %3493 = vmatprep.subr.bf16.mxu1 %v4305_v5  ;;  %v4359_v4 = vcombine.high %v528_v62, %v532_v63  ;;  %v4361_v5 = vcombine.high %v529_v0, %v533_v1  ;;  %v70_v54 = vld [vmem:[#allocation5 + $0x70] sm:$0xff] }
 0x109   :  { %v3898_v39 = vcombine.low %v66_v52, %v70_v54 }
 0x10b   :  { %3330 = vmatpush1.bf16.msra.mxu0 %v4302_v10  ;;  %3494 = vmatpush1.bf16.msra.mxu1 %v4304_v11  ;;  %v4358_v10 = vcombine.low %v528_v62, %v532_v63  ;;  %v4360_v11 = vcombine.low %v529_v0, %v533_v1  ;;  %v74_v63 = vld [vmem:[#allocation5 + $0x90] sm:$0xff]  ;;  %v75_v1 = vld [vmem:[#allocation5 + $0x98] sm:$0xff] }
 0x10c   :  { %3331 = vmatprep.subr.bf16.mxu0 %v4311_v13  ;;  %3495 = vmatprep.subr.bf16.mxu1 %v4313_v14  ;;  %v4367_v13 = vcombine.high %v536_v6, %v540_v7  ;;  %v4369_v14 = vcombine.high %v537_v8, %v541_v9  ;;  %v78_v0 = vld [vmem:[#allocation5 + $0xb0] sm:$0xff] }
 0x10f   :  { %3332 = vmatpush1.bf16.msra.mxu0 %v4310_v20  ;;  %3496 = vmatpush1.bf16.msra.mxu1 %v4312_v21  ;;  %v4366_v20 = vcombine.low %v536_v6, %v540_v7  ;;  %v4368_v21 = vcombine.low %v537_v8, %v541_v9  ;;  %v82_v6 = vld [vmem:[#allocation5 + $0xd0] sm:$0xff]  ;;  %v83_v8 = vld [vmem:[#allocation5 + $0xd8] sm:$0xff] }
 0x110   :  { %3333 = vmatprep.subr.bf16.mxu0 %v4319_v23  ;;  %3497 = vmatprep.subr.bf16.mxu1 %v4321_v24  ;;  %v4375_v23 = vcombine.high %v544_v16, %v548_v17  ;;  %v4377_v24 = vcombine.high %v545_v18, %v549_v19  ;;  %v86_v7 = vld [vmem:[#allocation5 + $0xf0] sm:$0xff]  ;;  %v87_v9 = vld [vmem:[#allocation5 + $0xf8] sm:$0xff] }
 0x113   :  { %3334 = vmatpush1.bf16.msra.mxu0 %v4318_v30  ;;  %3498 = vmatpush1.bf16.msra.mxu1 %v4320_v31  ;;  %v4374_v30 = vcombine.low %v544_v16, %v548_v17  ;;  %v4376_v31 = vcombine.low %v545_v18, %v549_v19  ;;  %v90_v16 = vld [vmem:[#allocation5 + $0x110] sm:$0xff]  ;;  %v91_v18 = vld [vmem:[#allocation5 + $0x118] sm:$0xff] }
 0x114   :  { %3335 = vmatprep.subr.bf16.mxu0 %v4327_v15  ;;  %3499 = vmatprep.subr.bf16.mxu1 %v4329_v33  ;;  %v4383_v15 = vcombine.high %v552_v26, %v556_v27  ;;  %v4385_v33 = vcombine.high %v553_v28, %v557_v29  ;;  %v94_v17 = vld [vmem:[#allocation5 + $0x130] sm:$0xff]  ;;  %v95_v19 = vld [vmem:[#allocation5 + $0x138] sm:$0xff] }
 0x117   :  { %3336 = vmatpush1.bf16.msra.mxu0 %v4326_v40  ;;  %3500 = vmatpush1.bf16.msra.mxu1 %v4328_v41  ;;  %v4382_v40 = vcombine.low %v552_v26, %v556_v27  ;;  %v4384_v41 = vcombine.low %v553_v28, %v557_v29  ;;  %v102_v26 = vld [vmem:[#allocation5 + $0x170] sm:$0xff]  ;;  %v99_v27 = vld [vmem:[#allocation5 + $0x158] sm:$0xff]  ;;  %v3922_v29 = vcombine.low %v90_v16, %v94_v17 }
 0x118   :  { %3337 = vmatprep.subr.bf16.mxu0 %v4335_v42  ;;  %3501 = vmatprep.subr.bf16.mxu1 %v4337_v43  ;;  %v4391_v42 = vcombine.high %v560_v34, %v564_v35  ;;  %v4393_v43 = vcombine.high %v561_v37, %v565_v38  ;;  %v103_v28 = vld [vmem:[#allocation5 + $0x178] sm:$0xff] }
 0x11b   :  { %3338 = vmatpush1.bf16.msra.mxu0 %v4334_v48  ;;  %3502 = vmatpush1.bf16.msra.mxu1 %v4336_v49  ;;  %v4390_v48 = vcombine.low %v560_v34, %v564_v35  ;;  %v4392_v49 = vcombine.low %v561_v37, %v565_v38  ;;  %v110_v34 = vld [vmem:[#allocation5 + $0x1b0] sm:$0xff]  ;;  %v107_v35 = vld [vmem:[#allocation5 + $0x198] sm:$0xff] }
 0x11c   :  { %3339 = vmatprep.subr.bf16.mxu0 %v4343_v50  ;;  %3503 = vmatprep.subr.bf16.mxu1 %v4345_v51  ;;  %v3891_v50 = vcombine.high %v58_v44, %v62_v45  ;;  %v3893_v51 = vcombine.high %v59_v25, %v63_v47  ;;  %v111_v37 = vld [vmem:[#allocation5 + $0x1b8] sm:$0xff] }
 0x11f   :  { %3340 = vmatpush1.bf16.msra.mxu0 %v4342_v58  ;;  %3504 = vmatpush1.bf16.msra.mxu1 %v4344_v59  ;;  %v71_v58 = vld [vmem:[#allocation5 + $0x78] sm:$0xff]  ;;  %v3890_v59 = vcombine.low %v58_v44, %v62_v45  ;;  %v118_v44 = vld [vmem:[#allocation5 + $0x1f0] sm:$0xff] }
 0x120   :  { %3341 = vmatprep.subr.bf16.mxu0 %v4351_v60  ;;  %3505 = vmatprep.subr.bf16.mxu1 %v4353_v61  ;;  %v3892_v60 = vcombine.low %v59_v25, %v63_v47  ;;  %v3899_v61 = vcombine.high %v66_v52, %v70_v54  ;;  %v3901_v62 = vcombine.high %v67_v56, %v71_v58  ;;  %v115_v45 = vld [vmem:[#allocation5 + $0x1d8] sm:$0xff]  ;;  %v126_v52 = vld [vmem:[#allocation5 + $0x230] sm:$0xff] }
 0x121   :  { %v119_v25 = vld [vmem:[#allocation5 + $0x1f8] sm:$0xff] }
 0x122   :  { %v123_v54 = vld [vmem:[#allocation5 + $0x218] sm:$0xff] }
 0x123   :  { %3342 = vmatpush1.bf16.msra.mxu0 %v4350_v2  ;;  %3506 = vmatpush1.bf16.msra.mxu1 %v4352_v3  ;;  %v79_v2 = vld [vmem:[#allocation5 + $0xb8] sm:$0xff]  ;;  %v3900_v3 = vcombine.low %v67_v56, %v71_v58 }
 0x124   :  { %3343 = vmatprep.subr.bf16.mxu0 %v4359_v4  ;;  %3507 = vmatprep.subr.bf16.mxu1 %v4361_v5  ;;  %v3907_v4 = vcombine.high %v74_v63, %v78_v0  ;;  %v3909_v5 = vcombine.high %v75_v1, %v79_v2  ;;  %v127_v56 = vld [vmem:[#allocation5 + $0x238] sm:$0xff] }
 0x127   :  { %3344 = vmatpush1.bf16.msra.mxu0 %v4358_v10  ;;  %3508 = vmatpush1.bf16.msra.mxu1 %v4360_v11  ;;  %v3906_v10 = vcombine.low %v74_v63, %v78_v0  ;;  %v3908_v11 = vcombine.low %v75_v1, %v79_v2  ;;  %v134_v63 = vld [vmem:[#allocation5 + $0x270] sm:$0xff]  ;;  %v131_v0 = vld [vmem:[#allocation5 + $0x258] sm:$0xff] }
 0x128   :  { %3345 = vmatprep.subr.bf16.mxu0 %v4367_v13  ;;  %3509 = vmatprep.subr.bf16.mxu1 %v4369_v14  ;;  %v3915_v13 = vcombine.high %v82_v6, %v86_v7  ;;  %v3917_v14 = vcombine.high %v83_v8, %v87_v9  ;;  %v135_v1 = vld [vmem:[#allocation5 + $0x278] sm:$0xff] }
 0x12b   :  { %3346 = vmatpush1.bf16.msra.mxu0 %v4366_v20  ;;  %3510 = vmatpush1.bf16.msra.mxu1 %v4368_v21  ;;  %v3914_v20 = vcombine.low %v82_v6, %v86_v7  ;;  %v3916_v21 = vcombine.low %v83_v8, %v87_v9  ;;  %v142_v6 = vld [vmem:[#allocation5 + $0x2b0] sm:$0xff]  ;;  %v139_v7 = vld [vmem:[#allocation5 + $0x298] sm:$0xff] }
 0x12c   :  { %3347 = vmatprep.subr.bf16.mxu0 %v4375_v23  ;;  %3511 = vmatprep.subr.bf16.mxu1 %v4377_v24  ;;  %v3923_v23 = vcombine.high %v90_v16, %v94_v17  ;;  %v98_v24 = vld [vmem:[#allocation5 + $0x150] sm:$0xff]  ;;  %v143_v8 = vld [vmem:[#allocation5 + $0x2b8] sm:$0xff] }
 0x12d   :  { %v3930_v38 = vcombine.low %v98_v24, %v102_v26  ;;  %v150_v16 = vld [vmem:[#allocation5 + $0x2f0] sm:$0xff]  ;;  %v147_v17 = vld [vmem:[#allocation5 + $0x2d8] sm:$0xff] }
 0x12f   :  { %3348 = vmatpush1.bf16.msra.mxu0 %v4374_v30  ;;  %3512 = vmatpush1.bf16.msra.mxu1 %v4376_v31  ;;  %v3924_v30 = vcombine.low %v91_v18, %v95_v19  ;;  %v3931_v31 = vcombine.high %v98_v24, %v102_v26  ;;  %v158_v24 = vld [vmem:[#allocation5 + $0x330] sm:$0xff]  ;;  %v155_v26 = vld [vmem:[#allocation5 + $0x318] sm:$0xff] }
 0x130   :  { %3349 = vmatprep.subr.bf16.mxu0 %v4383_v15  ;;  %3513 = vmatprep.subr.bf16.mxu1 %v4385_v33  ;;  %v3933_v15 = vcombine.high %v99_v27, %v103_v28  ;;  %v106_v33 = vld [vmem:[#allocation5 + $0x190] sm:$0xff] }
 0x131   :  { %v3938_v47 = vcombine.low %v106_v33, %v110_v34 }
 0x133   :  { %3350 = vmatpush1.bf16.msra.mxu0 %v4382_v40  ;;  %3514 = vmatpush1.bf16.msra.mxu1 %v4384_v41  ;;  %v3932_v40 = vcombine.low %v99_v27, %v103_v28  ;;  %v3939_v41 = vcombine.high %v106_v33, %v110_v34  ;;  %v159_v27 = vld [vmem:[#allocation5 + $0x338] sm:$0xff]  ;;  %v166_v33 = vld [vmem:[#allocation5 + $0x370] sm:$0xff] }
 0x134   :  { %3351 = vmatprep.subr.bf16.mxu0 %v4391_v42  ;;  %3515 = vmatprep.subr.bf16.mxu1 %v4393_v43  ;;  %v3941_v42 = vcombine.high %v107_v35, %v111_v37  ;;  %v114_v43 = vld [vmem:[#allocation5 + $0x1d0] sm:$0xff]  ;;  %v163_v34 = vld [vmem:[#allocation5 + $0x358] sm:$0xff] }
 0x135   :  { %v3946_v58 = vcombine.low %v114_v43, %v118_v44 }
 0x137   :  { %3352 = vmatpush1.bf16.msra.mxu0 %v4390_v48  ;;  %3516 = vmatpush1.bf16.msra.mxu1 %v4392_v49  ;;  %v3940_v48 = vcombine.low %v107_v35, %v111_v37  ;;  %v3947_v49 = vcombine.high %v114_v43, %v118_v44  ;;  %v167_v35 = vld [vmem:[#allocation5 + $0x378] sm:$0xff]  ;;  %v174_v43 = vld [vmem:[#allocation5 + $0x3b0] sm:$0xff] }
 0x138   :  { %3526 = vmatprep.subr.bf16.mxu0 %v3891_v50  ;;  %3690 = vmatprep.subr.bf16.mxu1 %v3893_v51  ;;  %v3949_v50 = vcombine.high %v115_v45, %v119_v25  ;;  %v122_v51 = vld [vmem:[#allocation5 + $0x210] sm:$0xff]  ;;  %v171_v44 = vld [vmem:[#allocation5 + $0x398] sm:$0xff] }
 0x139   :  { %v3954_v2 = vcombine.low %v122_v51, %v126_v52 }
 0x13a   :  { %3354 = vmatmul.mubr.bf16.vlgmr.msra.gmra.mrb[0].mxu0 %v4676_v55  ;;  %3518 = vmatmul.mubr.bf16.vlgmr.msra.gmra.mrb[0].mxu1 %v4676_v55 }
 0x13b   :  { %3527 = vmatpush1.bf16.msra.mxu0 %v3890_v59  ;;  %3691 = vmatpush1.bf16.msra.mxu1 %v3892_v60  ;;  %v3948_v59 = vcombine.low %v115_v45, %v119_v25  ;;  %v3955_v60 = vcombine.high %v122_v51, %v126_v52  ;;  %v175_v45 = vld [vmem:[#allocation5 + $0x3b8] sm:$0xff]  ;;  %v182_v51 = vld [vmem:[#allocation5 + $0x3f0] sm:$0xff] }
 0x13c   :  { %3528 = vmatprep.subr.bf16.mxu0 %v3899_v61  ;;  %3692 = vmatprep.subr.bf16.mxu1 %v3901_v62  ;;  %v3957_v61 = vcombine.high %v123_v54, %v127_v56  ;;  %v130_v62 = vld [vmem:[#allocation5 + $0x250] sm:$0xff]  ;;  %v179_v52 = vld [vmem:[#allocation5 + $0x3d8] sm:$0xff] }
 0x13d   :  { %3558 = vmatprep.mubr.bf16.mxu0 %v4628_v57  ;;  %3722 = vmatprep.mubr.bf16.mxu1 %v4628_v57  ;;  %v3925_v57 = vcombine.high %v91_v18, %v95_v19  ;;  %v3962_v9 = vcombine.low %v130_v62, %v134_v63  ;;  %v151_v18 = vld [vmem:[#allocation5 + $0x2f8] sm:$0xff] }
 0x13f   :  { %3529 = vmatpush1.bf16.msra.mxu0 %v3898_v39  ;;  %3693 = vmatpush1.bf16.msra.mxu1 %v3900_v3  ;;  %v3956_v39 = vcombine.low %v123_v54, %v127_v56  ;;  %v3963_v3 = vcombine.high %v130_v62, %v134_v63  ;;  %v183_v54 = vld [vmem:[#allocation5 + $0x3f8] sm:$0xff]  ;;  %v190_v62 = vld [vmem:[#allocation5 + $0x430] sm:$0xff] }
 0x140   :  { %3530 = vmatprep.subr.bf16.mxu0 %v3907_v4  ;;  %3694 = vmatprep.subr.bf16.mxu1 %v3909_v5  ;;  %v3965_v4 = vcombine.high %v131_v0, %v135_v1  ;;  %v138_v5 = vld [vmem:[#allocation5 + $0x290] sm:$0xff]  ;;  %v187_v63 = vld [vmem:[#allocation5 + $0x418] sm:$0xff] }
 0x141   :  { %v3970_v19 = vcombine.low %v138_v5, %v142_v6 }
 0x143   :  { %3531 = vmatpush1.bf16.msra.mxu0 %v3906_v10  ;;  %3695 = vmatpush1.bf16.msra.mxu1 %v3908_v11  ;;  %v3964_v10 = vcombine.low %v131_v0, %v135_v1  ;;  %v3971_v11 = vcombine.high %v138_v5, %v142_v6  ;;  %v191_v0 = vld [vmem:[#allocation5 + $0x438] sm:$0xff]  ;;  %v198_v5 = vld [vmem:[#allocation5 + $0x470] sm:$0xff] }
 0x144   :  { %3532 = vmatprep.subr.bf16.mxu0 %v3915_v13  ;;  %3696 = vmatprep.subr.bf16.mxu1 %v3917_v14  ;;  %v3973_v13 = vcombine.high %v139_v7, %v143_v8  ;;  %v146_v14 = vld [vmem:[#allocation5 + $0x2d0] sm:$0xff]  ;;  %v195_v6 = vld [vmem:[#allocation5 + $0x458] sm:$0xff] }
 0x145   :  { %v3978_v28 = vcombine.low %v146_v14, %v150_v16 }
 0x147   :  { %3533 = vmatpush1.bf16.msra.mxu0 %v3914_v20  ;;  %3697 = vmatpush1.bf16.msra.mxu1 %v3916_v21  ;;  %v3972_v20 = vcombine.low %v139_v7, %v143_v8  ;;  %v3979_v21 = vcombine.high %v146_v14, %v150_v16  ;;  %v199_v7 = vld [vmem:[#allocation5 + $0x478] sm:$0xff]  ;;  %v206_v14 = vld [vmem:[#allocation5 + $0x4b0] sm:$0xff] }
 0x148   :  { %3534 = vmatprep.subr.bf16.mxu0 %v3923_v23  ;;  %3698 = vmatprep.subr.bf16.mxu1 %v3925_v57  ;;  %v3981_v23 = vcombine.high %v147_v17, %v151_v18  ;;  %v154_v57 = vld [vmem:[#allocation5 + $0x310] sm:$0xff]  ;;  %v203_v16 = vld [vmem:[#allocation5 + $0x498] sm:$0xff] }
 0x149   :  { %v3986_v37 = vcombine.low %v154_v57, %v158_v24 }
 0x14b   :  { %3535 = vmatpush1.bf16.msra.mxu0 %v3922_v29  ;;  %3699 = vmatpush1.bf16.msra.mxu1 %v3924_v30  ;;  %v3980_v29 = vcombine.low %v147_v17, %v151_v18  ;;  %v3987_v30 = vcombine.high %v154_v57, %v158_v24  ;;  %v207_v17 = vld [vmem:[#allocation5 + $0x4b8] sm:$0xff]  ;;  %v214_v57 = vld [vmem:[#allocation5 + $0x4f0] sm:$0xff] }
 0x14c   :  { %3536 = vmatprep.subr.bf16.mxu0 %v3931_v31  ;;  %3700 = vmatprep.subr.bf16.mxu1 %v3933_v15  ;;  %v3989_v31 = vcombine.high %v155_v26, %v159_v27  ;;  %v162_v15 = vld [vmem:[#allocation5 + $0x350] sm:$0xff]  ;;  %v211_v24 = vld [vmem:[#allocation5 + $0x4d8] sm:$0xff] }
 0x14d   :  { %v3994_v25 = vcombine.low %v162_v15, %v166_v33 }
 0x14f   :  { %3537 = vmatpush1.bf16.msra.mxu0 %v3930_v38  ;;  %3701 = vmatpush1.bf16.msra.mxu1 %v3932_v40  ;;  %v3988_v38 = vcombine.low %v155_v26, %v159_v27  ;;  %v3995_v40 = vcombine.high %v162_v15, %v166_v33  ;;  %v215_v26 = vld [vmem:[#allocation5 + $0x4f8] sm:$0xff] }
 0x150   :  { %3538 = vmatprep.subr.bf16.mxu0 %v3939_v41  ;;  %3702 = vmatprep.subr.bf16.mxu1 %v3941_v42  ;;  %v3997_v41 = vcombine.high %v163_v34, %v167_v35  ;;  %v170_v42 = vld [vmem:[#allocation5 + $0x390] sm:$0xff]  ;;  %v219_v15 = vld [vmem:[#allocation5 + $0x518] sm:$0xff] }
 0x151   :  { %v4002_v56 = vcombine.low %v170_v42, %v174_v43  ;;  %v223_v33 = vld [vmem:[#allocation5 + $0x538] sm:$0xff] }
 0x153   :  { %3539 = vmatpush1.bf16.msra.mxu0 %v3938_v47  ;;  %3703 = vmatpush1.bf16.msra.mxu1 %v3940_v48  ;;  %v3996_v47 = vcombine.low %v163_v34, %v167_v35  ;;  %v4003_v48 = vcombine.high %v170_v42, %v174_v43  ;;  %v4044_v35 = vcombine.low %v211_v24, %v215_v26  ;;  %v231_v42 = vld [vmem:[#allocation5 + $0x578] sm:$0xff] }
 0x154   :  { %3540 = vmatprep.subr.bf16.mxu0 %v3947_v49  ;;  %3704 = vmatprep.subr.bf16.mxu1 %v3949_v50  ;;  %v4005_v49 = vcombine.high %v171_v44, %v175_v45  ;;  %v178_v50 = vld [vmem:[#allocation5 + $0x3d0] sm:$0xff] }
 0x155   :  { %v4010_v1 = vcombine.low %v178_v50, %v182_v51 }
 0x157   :  { %3541 = vmatpush1.bf16.msra.mxu0 %v3946_v58  ;;  %3705 = vmatpush1.bf16.msra.mxu1 %v3948_v59  ;;  %v4004_v58 = vcombine.low %v171_v44, %v175_v45  ;;  %v4011_v59 = vcombine.high %v178_v50, %v182_v51  ;;  %v4052_v44 = vcombine.low %v219_v15, %v223_v33  ;;  %v239_v50 = vld [vmem:[#allocation5 + $0x5b8] sm:$0xff] }
 0x158   :  { %3542 = vmatprep.subr.bf16.mxu0 %v3955_v60  ;;  %3706 = vmatprep.subr.bf16.mxu1 %v3957_v61  ;;  %v4013_v60 = vcombine.high %v179_v52, %v183_v54  ;;  %v186_v61 = vld [vmem:[#allocation5 + $0x410] sm:$0xff] }
 0x159   :  { %v4018_v8 = vcombine.low %v186_v61, %v190_v62 }
 0x15b   :  { %3543 = vmatpush1.bf16.msra.mxu0 %v3954_v2  ;;  %3707 = vmatpush1.bf16.msra.mxu1 %v3956_v39  ;;  %v4012_v2 = vcombine.low %v179_v52, %v183_v54  ;;  %v4019_v39 = vcombine.high %v186_v61, %v190_v62  ;;  %v247_v61 = vld [vmem:[#allocation5 + $0x5f8] sm:$0xff] }
 0x15c   :  { %3544 = vmatprep.subr.bf16.mxu0 %v3963_v3  ;;  %3708 = vmatprep.subr.bf16.mxu1 %v3965_v4  ;;  %v4021_v3 = vcombine.high %v187_v63, %v191_v0  ;;  %v194_v4 = vld [vmem:[#allocation5 + $0x450] sm:$0xff] }
 0x15d   :  { %v4026_v18 = vcombine.low %v194_v4, %v198_v5 }
 0x15f   :  { %3545 = vmatpush1.bf16.msra.mxu0 %v3962_v9  ;;  %3709 = vmatpush1.bf16.msra.mxu1 %v3964_v10  ;;  %v4020_v9 = vcombine.low %v187_v63, %v191_v0  ;;  %v4027_v10 = vcombine.high %v194_v4, %v198_v5  ;;  %v255_v4 = vld [vmem:[#allocation5 + $0x638] sm:$0xff] }
 0x160   :  { %3546 = vmatprep.subr.bf16.mxu0 %v3971_v11  ;;  %3710 = vmatprep.subr.bf16.mxu1 %v3973_v13  ;;  %v4029_v11 = vcombine.high %v195_v6, %v199_v7  ;;  %v202_v13 = vld [vmem:[#allocation5 + $0x490] sm:$0xff] }
 0x161   :  { %v4034_v27 = vcombine.low %v202_v13, %v206_v14 }
 0x163   :  { %3547 = vmatpush1.bf16.msra.mxu0 %v3970_v19  ;;  %3711 = vmatpush1.bf16.msra.mxu1 %v3972_v20  ;;  %v4028_v19 = vcombine.low %v195_v6, %v199_v7  ;;  %v4035_v20 = vcombine.high %v202_v13, %v206_v14  ;;  %v263_v13 = vld [vmem:[#allocation5 + $0x678] sm:$0xff] }
 0x164   :  { %3548 = vmatprep.subr.bf16.mxu0 %v3979_v21  ;;  %3712 = vmatprep.subr.bf16.mxu1 %v3981_v23  ;;  %v4037_v21 = vcombine.high %v203_v16, %v207_v17  ;;  %v210_v23 = vld [vmem:[#allocation5 + $0x4d0] sm:$0xff] }
 0x165   :  { %v4042_v34 = vcombine.low %v210_v23, %v214_v57 }
 0x167   :  { %3549 = vmatpush1.bf16.msra.mxu0 %v3978_v28  ;;  %3713 = vmatpush1.bf16.msra.mxu1 %v3980_v29  ;;  %v4043_v28 = vcombine.high %v210_v23, %v214_v57  ;;  %v4045_v29 = vcombine.high %v211_v24, %v215_v26  ;;  %v271_v23 = vld [vmem:[#allocation5 + $0x6b8] sm:$0xff] }
 0x168   :  { %3550 = vmatprep.subr.bf16.mxu0 %v3987_v30  ;;  %3714 = vmatprep.subr.bf16.mxu1 %v3989_v31  ;;  %v218_v30 = vld [vmem:[#allocation5 + $0x510] sm:$0xff] }
 0x169   :  { %v222_v31 = vld [vmem:[#allocation5 + $0x530] sm:$0xff] }
 0x16a   :  { %v4050_v43 = vcombine.low %v218_v30, %v222_v31 }
 0x16b   :  { %3551 = vmatpush1.bf16.msra.mxu0 %v3986_v37  ;;  %3715 = vmatpush1.bf16.msra.mxu1 %v3988_v38  ;;  %v4051_v37 = vcombine.high %v218_v30, %v222_v31  ;;  %v226_v38 = vld [vmem:[#allocation5 + $0x550] sm:$0xff]  ;;  %v279_v30 = vld [vmem:[#allocation5 + $0x6f8] sm:$0xff] }
 0x16c   :  { %3552 = vmatprep.subr.bf16.mxu0 %v3995_v40  ;;  %3716 = vmatprep.subr.bf16.mxu1 %v3997_v41  ;;  %v230_v40 = vld [vmem:[#allocation5 + $0x570] sm:$0xff]  ;;  %v227_v41 = vld [vmem:[#allocation5 + $0x558] sm:$0xff] }
 0x16d   :  { %v4059_v45 = vcombine.high %v226_v38, %v230_v40  ;;  %v4058_v51 = vcombine.low %v226_v38, %v230_v40  ;;  %v4060_v52 = vcombine.low %v227_v41, %v231_v42  ;;  %v287_v38 = vld [vmem:[#allocation5 + $0x738] sm:$0xff] }
 0x16f   :  { %3553 = vmatpush1.bf16.msra.mxu0 %v3994_v25  ;;  %3717 = vmatpush1.bf16.msra.mxu1 %v3996_v47  ;;  %v4061_v25 = vcombine.high %v227_v41, %v231_v42  ;;  %v234_v47 = vld [vmem:[#allocation5 + $0x590] sm:$0xff] }
 0x170   :  { %3554 = vmatprep.subr.bf16.mxu0 %v4003_v48  ;;  %3718 = vmatprep.subr.bf16.mxu1 %v4005_v49  ;;  %v238_v48 = vld [vmem:[#allocation5 + $0x5b0] sm:$0xff]  ;;  %v235_v49 = vld [vmem:[#allocation5 + $0x598] sm:$0xff] }
 0x171   :  { %v4067_v54 = vcombine.high %v234_v47, %v238_v48  ;;  %v4066_v62 = vcombine.low %v234_v47, %v238_v48  ;;  %v4068_v63 = vcombine.low %v235_v49, %v239_v50  ;;  %v295_v47 = vld [vmem:[#allocation5 + $0x778] sm:$0xff] }
 0x173   :  { %3555 = vmatpush1.bf16.msra.mxu0 %v4002_v56  ;;  %3719 = vmatpush1.bf16.msra.mxu1 %v4004_v58  ;;  %v4069_v56 = vcombine.high %v235_v49, %v239_v50  ;;  %v242_v58 = vld [vmem:[#allocation5 + $0x5d0] sm:$0xff] }
 0x174   :  { %3556 = vmatprep.subr.bf16.mxu0 %v4011_v59  ;;  %3720 = vmatprep.subr.bf16.mxu1 %v4013_v60  ;;  %v246_v59 = vld [vmem:[#allocation5 + $0x5f0] sm:$0xff]  ;;  %v243_v60 = vld [vmem:[#allocation5 + $0x5d8] sm:$0xff] }
 0x175   :  { %v4075_v0 = vcombine.high %v242_v58, %v246_v59  ;;  %v4074_v5 = vcombine.low %v242_v58, %v246_v59  ;;  %v4076_v6 = vcombine.low %v243_v60, %v247_v61  ;;  %v303_v58 = vld [vmem:[#allocation5 + $0x7b8] sm:$0xff] }
 0x177   :  { %3557 = vmatpush1.bf16.msra.mxu0 %v4010_v1  ;;  %3721 = vmatpush1.bf16.msra.mxu1 %v4012_v2  ;;  %v4077_v1 = vcombine.high %v243_v60, %v247_v61  ;;  %v250_v2 = vld [vmem:[#allocation5 + $0x610] sm:$0xff] }
 0x178   :  { %3567 = vmatprep.subr.bf16.mxu0 %v4019_v39  ;;  %3731 = vmatprep.subr.bf16.mxu1 %v4021_v3  ;;  %v254_v39 = vld [vmem:[#allocation5 + $0x630] sm:$0xff]  ;;  %v251_v3 = vld [vmem:[#allocation5 + $0x618] sm:$0xff] }
 0x179   :  { %v4083_v7 = vcombine.high %v250_v2, %v254_v39  ;;  %v4082_v14 = vcombine.low %v250_v2, %v254_v39  ;;  %v311_v2 = vld [vmem:[#allocation5 + $0x7f8] sm:$0xff] }
 0x17a   :  { %3559 = vmatmul.mubr.bf16.vlgmr.msra.gmra.mrb[4].mxu0 %v4634_v12  ;;  %3723 = vmatmul.mubr.bf16.vlgmr.msra.gmra.mrb[4].mxu1 %v4634_v12  ;;  %v4036_v12 = vcombine.low %v203_v16, %v207_v17  ;;  %v4084_v16 = vcombine.low %v251_v3, %v255_v4 }
 0x17b   :  { %3568 = vmatpush1.bf16.msra.mxu0 %v4018_v8  ;;  %3732 = vmatpush1.bf16.msra.mxu1 %v4020_v9  ;;  %v4085_v8 = vcombine.high %v251_v3, %v255_v4  ;;  %v258_v9 = vld [vmem:[#allocation5 + $0x650] sm:$0xff] }
 0x17c   :  { %3569 = vmatprep.subr.bf16.mxu0 %v4027_v10  ;;  %3733 = vmatprep.subr.bf16.mxu1 %v4029_v11  ;;  %v262_v10 = vld [vmem:[#allocation5 + $0x670] sm:$0xff]  ;;  %v259_v11 = vld [vmem:[#allocation5 + $0x658] sm:$0xff] }
 0x17d   :  { %3599 = vmatprep.mubr.bf16.mxu0 %v4640_v22  ;;  %3763 = vmatprep.mubr.bf16.mxu1 %v4640_v22  ;;  %v4053_v22 = vcombine.high %v219_v15, %v223_v33  ;;  %v4091_v17 = vcombine.high %v258_v9, %v262_v10  ;;  %v4090_v57 = vcombine.low %v258_v9, %v262_v10  ;;  %v319_v9 = vld [vmem:[#allocation5 + $0x838] sm:$0xff] }
 0x17e   :  { %v4092_v24 = vcombine.low %v259_v11, %v263_v13 }
 0x17f   :  { %3570 = vmatpush1.bf16.msra.mxu0 %v4026_v18  ;;  %3734 = vmatpush1.bf16.msra.mxu1 %v4028_v19  ;;  %v4093_v18 = vcombine.high %v259_v11, %v263_v13  ;;  %v266_v19 = vld [vmem:[#allocation5 + $0x690] sm:$0xff] }
 0x180   :  { %3571 = vmatprep.subr.bf16.mxu0 %v4035_v20  ;;  %3735 = vmatprep.subr.bf16.mxu1 %v4037_v21  ;;  %v270_v20 = vld [vmem:[#allocation5 + $0x6b0] sm:$0xff]  ;;  %v267_v21 = vld [vmem:[#allocation5 + $0x698] sm:$0xff] }
 0x181   :  { %v4099_v26 = vcombine.high %v266_v19, %v270_v20  ;;  %v4098_v31 = vcombine.low %v266_v19, %v270_v20  ;;  %v4100_v15 = vcombine.low %v267_v21, %v271_v23  ;;  %v327_v19 = vld [vmem:[#allocation5 + $0x878] sm:$0xff] }
 0x183   :  { %3572 = vmatpush1.bf16.msra.mxu0 %v4034_v27  ;;  %3736 = vmatpush1.bf16.msra.mxu1 %v4036_v12  ;;  %v4101_v27 = vcombine.high %v267_v21, %v271_v23  ;;  %v274_v12 = vld [vmem:[#allocation5 + $0x6d0] sm:$0xff] }
 0x184   :  { %3573 = vmatprep.subr.bf16.mxu0 %v4043_v28  ;;  %3737 = vmatprep.subr.bf16.mxu1 %v4045_v29  ;;  %v278_v28 = vld [vmem:[#allocation5 + $0x6f0] sm:$0xff]  ;;  %v275_v29 = vld [vmem:[#allocation5 + $0x6d8] sm:$0xff] }
 0x185   :  { %v4107_v33 = vcombine.high %v274_v12, %v278_v28  ;;  %v4106_v40 = vcombine.low %v274_v12, %v278_v28  ;;  %v4108_v41 = vcombine.low %v275_v29, %v279_v30  ;;  %v335_v12 = vld [vmem:[#allocation5 + $0x8b8] sm:$0xff] }
 0x187   :  { %3574 = vmatpush1.bf16.msra.mxu0 %v4042_v34  ;;  %3738 = vmatpush1.bf16.msra.mxu1 %v4044_v35  ;;  %v4109_v34 = vcombine.high %v275_v29, %v279_v30  ;;  %v282_v35 = vld [vmem:[#allocation5 + $0x710] sm:$0xff] }
 0x188   :  { %3575 = vmatprep.subr.bf16.mxu0 %v4051_v37  ;;  %3739 = vmatprep.subr.bf16.mxu1 %v4053_v22  ;;  %v286_v37 = vld [vmem:[#allocation5 + $0x730] sm:$0xff]  ;;  %v283_v22 = vld [vmem:[#allocation5 + $0x718] sm:$0xff] }
 0x189   :  { %v4115_v42 = vcombine.high %v282_v35, %v286_v37  ;;  %v4114_v48 = vcombine.low %v282_v35, %v286_v37  ;;  %v4116_v49 = vcombine.low %v283_v22, %v287_v38  ;;  %v343_v35 = vld [vmem:[#allocation5 + $0x8f8] sm:$0xff] }
 0x18b   :  { %3576 = vmatpush1.bf16.msra.mxu0 %v4050_v43  ;;  %3740 = vmatpush1.bf16.msra.mxu1 %v4052_v44  ;;  %v4117_v43 = vcombine.high %v283_v22, %v287_v38  ;;  %v290_v44 = vld [vmem:[#allocation5 + $0x750] sm:$0xff] }
 0x18c   :  { %3577 = vmatprep.subr.bf16.mxu0 %v4059_v45  ;;  %3741 = vmatprep.subr.bf16.mxu1 %v4061_v25  ;;  %v294_v45 = vld [vmem:[#allocation5 + $0x770] sm:$0xff]  ;;  %v291_v25 = vld [vmem:[#allocation5 + $0x758] sm:$0xff] }
 0x18d   :  { %v4123_v50 = vcombine.high %v290_v44, %v294_v45  ;;  %v4122_v59 = vcombine.low %v290_v44, %v294_v45  ;;  %v4124_v60 = vcombine.low %v291_v25, %v295_v47 }
 0x18f   :  { %3578 = vmatpush1.bf16.msra.mxu0 %v4058_v51  ;;  %3742 = vmatpush1.bf16.msra.mxu1 %v4060_v52  ;;  %v4125_v51 = vcombine.high %v291_v25, %v295_v47  ;;  %v298_v52 = vld [vmem:[#allocation5 + $0x790] sm:$0xff] }
 0x190   :  { %3579 = vmatprep.subr.bf16.mxu0 %v4067_v54  ;;  %3743 = vmatprep.subr.bf16.mxu1 %v4069_v56  ;;  %v302_v54 = vld [vmem:[#allocation5 + $0x7b0] sm:$0xff]  ;;  %v299_v56 = vld [vmem:[#allocation5 + $0x798] sm:$0xff] }
 0x191   :  { %v4131_v61 = vcombine.high %v298_v52, %v302_v54  ;;  %v4130_v39 = vcombine.low %v298_v52, %v302_v54  ;;  %v4132_v3 = vcombine.low %v299_v56, %v303_v58  ;;  %v354_v47 = vld [vmem:[#allocation5 + $0x950] sm:$0xff] }
 0x193   :  { %3580 = vmatpush1.bf16.msra.mxu0 %v4066_v62  ;;  %3744 = vmatpush1.bf16.msra.mxu1 %v4068_v63  ;;  %v4133_v62 = vcombine.high %v299_v56, %v303_v58  ;;  %v306_v63 = vld [vmem:[#allocation5 + $0x7d0] sm:$0xff] }
 0x194   :  { %3581 = vmatprep.subr.bf16.mxu0 %v4075_v0  ;;  %3745 = vmatprep.subr.bf16.mxu1 %v4077_v1  ;;  %v310_v0 = vld [vmem:[#allocation5 + $0x7f0] sm:$0xff]  ;;  %v307_v1 = vld [vmem:[#allocation5 + $0x7d8] sm:$0xff] }
 0x195   :  { %v4139_v4 = vcombine.high %v306_v63, %v310_v0  ;;  %v4138_v10 = vcombine.low %v306_v63, %v310_v0  ;;  %v4140_v11 = vcombine.low %v307_v1, %v311_v2  ;;  %v362_v58 = vld [vmem:[#allocation5 + $0x990] sm:$0xff] }
 0x197   :  { %3582 = vmatpush1.bf16.msra.mxu0 %v4074_v5  ;;  %3746 = vmatpush1.bf16.msra.mxu1 %v4076_v6  ;;  %v4141_v5 = vcombine.high %v307_v1, %v311_v2  ;;  %v314_v6 = vld [vmem:[#allocation5 + $0x810] sm:$0xff] }
 0x198   :  { %3583 = vmatprep.subr.bf16.mxu0 %v4083_v7  ;;  %3747 = vmatprep.subr.bf16.mxu1 %v4085_v8  ;;  %v318_v7 = vld [vmem:[#allocation5 + $0x830] sm:$0xff]  ;;  %v315_v8 = vld [vmem:[#allocation5 + $0x818] sm:$0xff] }
 0x199   :  { %v4147_v13 = vcombine.high %v314_v6, %v318_v7  ;;  %v4146_v20 = vcombine.low %v314_v6, %v318_v7  ;;  %v4148_v21 = vcombine.low %v315_v8, %v319_v9  ;;  %v370_v2 = vld [vmem:[#allocation5 + $0x9d0] sm:$0xff] }
 0x19b   :  { %3584 = vmatpush1.bf16.msra.mxu0 %v4082_v14  ;;  %3748 = vmatpush1.bf16.msra.mxu1 %v4084_v16  ;;  %v4149_v14 = vcombine.high %v315_v8, %v319_v9  ;;  %v322_v16 = vld [vmem:[#allocation5 + $0x850] sm:$0xff] }
 0x19c   :  { %3585 = vmatprep.subr.bf16.mxu0 %v4091_v17  ;;  %3749 = vmatprep.subr.bf16.mxu1 %v4093_v18  ;;  %v326_v17 = vld [vmem:[#allocation5 + $0x870] sm:$0xff]  ;;  %v323_v18 = vld [vmem:[#allocation5 + $0x858] sm:$0xff] }
 0x19d   :  { %v4155_v23 = vcombine.high %v322_v16, %v326_v17  ;;  %v4154_v28 = vcombine.low %v322_v16, %v326_v17  ;;  %v4156_v29 = vcombine.low %v323_v18, %v327_v19  ;;  %v378_v9 = vld [vmem:[#allocation5 + $0xa10] sm:$0xff] }
 0x19f   :  { %3586 = vmatpush1.bf16.msra.mxu0 %v4090_v57  ;;  %3750 = vmatpush1.bf16.msra.mxu1 %v4092_v24  ;;  %v4157_v57 = vcombine.high %v323_v18, %v327_v19  ;;  %v330_v24 = vld [vmem:[#allocation5 + $0x890] sm:$0xff] }
 0x1a0   :  { %3587 = vmatprep.subr.bf16.mxu0 %v4099_v26  ;;  %3751 = vmatprep.subr.bf16.mxu1 %v4101_v27  ;;  %v334_v26 = vld [vmem:[#allocation5 + $0x8b0] sm:$0xff]  ;;  %v331_v27 = vld [vmem:[#allocation5 + $0x898] sm:$0xff] }
 0x1a1   :  { %v4163_v30 = vcombine.high %v330_v24, %v334_v26  ;;  %v4162_v37 = vcombine.low %v330_v24, %v334_v26  ;;  %v386_v19 = vld [vmem:[#allocation5 + $0xa50] sm:$0xff] }
 0x1a3   :  { %3588 = vmatpush1.bf16.msra.mxu0 %v4098_v31  ;;  %3752 = vmatpush1.bf16.msra.mxu1 %v4100_v15  ;;  %v4165_v31 = vcombine.high %v331_v27, %v335_v12  ;;  %v338_v15 = vld [vmem:[#allocation5 + $0x8d0] sm:$0xff] }
 0x1a4   :  { %3589 = vmatprep.subr.bf16.mxu0 %v4107_v33  ;;  %3753 = vmatprep.subr.bf16.mxu1 %v4109_v34  ;;  %v342_v33 = vld [vmem:[#allocation5 + $0x8f0] sm:$0xff]  ;;  %v339_v34 = vld [vmem:[#allocation5 + $0x8d8] sm:$0xff] }
 0x1a5   :  { %v4171_v22 = vcombine.high %v338_v15, %v342_v33  ;;  %v4173_v38 = vcombine.high %v339_v34, %v343_v35  ;;  %v4170_v44 = vcombine.low %v338_v15, %v342_v33  ;;  %v4172_v45 = vcombine.low %v339_v34, %v343_v35  ;;  %v402_v35 = vld [vmem:[#allocation5 + $0xad0] sm:$0xff] }
 0x1a7   :  { %3590 = vmatpush1.bf16.msra.mxu0 %v4106_v40  ;;  %3754 = vmatpush1.bf16.msra.mxu1 %v4108_v41  ;;  %v346_v40 = vld [vmem:[#allocation5 + $0x910] sm:$0xff] }
 0x1a8   :  { %3591 = vmatprep.subr.bf16.mxu0 %v4115_v42  ;;  %3755 = vmatprep.subr.bf16.mxu1 %v4117_v43  ;;  %v350_v41 = vld [vmem:[#allocation5 + $0x930] sm:$0xff]  ;;  %v347_v42 = vld [vmem:[#allocation5 + $0x918] sm:$0xff] }
 0x1a9   :  { %v351_v43 = vld [vmem:[#allocation5 + $0x938] sm:$0xff]  ;;  %v4179_v25 = vcombine.high %v346_v40, %v350_v41 }
 0x1aa   :  { %v4180_v52 = vcombine.low %v347_v42, %v351_v43 }
 0x1ab   :  { %3592 = vmatpush1.bf16.msra.mxu0 %v4114_v48  ;;  %3756 = vmatpush1.bf16.msra.mxu1 %v4116_v49  ;;  %v358_v48 = vld [vmem:[#allocation5 + $0x970] sm:$0xff]  ;;  %v355_v49 = vld [vmem:[#allocation5 + $0x958] sm:$0xff] }
 0x1ac   :  { %3593 = vmatprep.subr.bf16.mxu0 %v4123_v50  ;;  %3757 = vmatprep.subr.bf16.mxu1 %v4125_v51  ;;  %v359_v50 = vld [vmem:[#allocation5 + $0x978] sm:$0xff]  ;;  %v4178_v51 = vcombine.low %v346_v40, %v350_v41  ;;  %v4187_v54 = vcombine.high %v354_v47, %v358_v48 }
 0x1ad   :  { %v4189_v56 = vcombine.high %v355_v49, %v359_v50  ;;  %v4188_v63 = vcombine.low %v355_v49, %v359_v50  ;;  %v418_v50 = vld [vmem:[#allocation5 + $0xb50] sm:$0xff] }
 0x1af   :  { %3594 = vmatpush1.bf16.msra.mxu0 %v4122_v59  ;;  %3758 = vmatpush1.bf16.msra.mxu1 %v4124_v60  ;;  %v366_v59 = vld [vmem:[#allocation5 + $0x9b0] sm:$0xff]  ;;  %v363_v60 = vld [vmem:[#allocation5 + $0x998] sm:$0xff] }
 0x1b0   :  { %3595 = vmatprep.subr.bf16.mxu0 %v4131_v61  ;;  %3759 = vmatprep.subr.bf16.mxu1 %v4133_v62  ;;  %v367_v61 = vld [vmem:[#allocation5 + $0x9b8] sm:$0xff]  ;;  %v4186_v62 = vcombine.low %v354_v47, %v358_v48  ;;  %v4195_v0 = vcombine.high %v362_v58, %v366_v59 }
 0x1b1   :  { %v4197_v1 = vcombine.high %v363_v60, %v367_v61  ;;  %v4196_v6 = vcombine.low %v363_v60, %v367_v61  ;;  %v426_v61 = vld [vmem:[#allocation5 + $0xb90] sm:$0xff] }
 0x1b3   :  { %3596 = vmatpush1.bf16.msra.mxu0 %v4130_v39  ;;  %3760 = vmatpush1.bf16.msra.mxu1 %v4132_v3  ;;  %v374_v39 = vld [vmem:[#allocation5 + $0x9f0] sm:$0xff]  ;;  %v371_v3 = vld [vmem:[#allocation5 + $0x9d8] sm:$0xff] }
 0x1b4   :  { %3597 = vmatprep.subr.bf16.mxu0 %v4139_v4  ;;  %3761 = vmatprep.subr.bf16.mxu1 %v4141_v5  ;;  %v375_v4 = vld [vmem:[#allocation5 + $0x9f8] sm:$0xff]  ;;  %v4194_v5 = vcombine.low %v362_v58, %v366_v59  ;;  %v4203_v7 = vcombine.high %v370_v2, %v374_v39 }
 0x1b5   :  { %v4205_v8 = vcombine.high %v371_v3, %v375_v4  ;;  %v4204_v16 = vcombine.low %v371_v3, %v375_v4  ;;  %v434_v4 = vld [vmem:[#allocation5 + $0xbd0] sm:$0xff] }
 0x1b7   :  { %3598 = vmatpush1.bf16.msra.mxu0 %v4138_v10  ;;  %3762 = vmatpush1.bf16.msra.mxu1 %v4140_v11  ;;  %v382_v10 = vld [vmem:[#allocation5 + $0xa30] sm:$0xff]  ;;  %v379_v11 = vld [vmem:[#allocation5 + $0xa18] sm:$0xff] }
 0x1b8   :  { %3608 = vmatprep.subr.bf16.mxu0 %v4147_v13  ;;  %3772 = vmatprep.subr.bf16.mxu1 %v4149_v14  ;;  %v383_v13 = vld [vmem:[#allocation5 + $0xa38] sm:$0xff]  ;;  %v4202_v14 = vcombine.low %v370_v2, %v374_v39  ;;  %v4211_v17 = vcombine.high %v378_v9, %v382_v10 }
 0x1b9   :  { %v4213_v18 = vcombine.high %v379_v11, %v383_v13  ;;  %v4212_v24 = vcombine.low %v379_v11, %v383_v13  ;;  %v442_v13 = vld [vmem:[#allocation5 + $0xc10] sm:$0xff] }
 0x1ba   :  { %3600 = vmatmul.mubr.bf16.vlgmr.msra.gmra.mrb[4].mxu0 %v4648_v53  ;;  %3764 = vmatmul.mubr.bf16.vlgmr.msra.gmra.mrb[4].mxu1 %v4648_v53  ;;  %v4164_v53 = vcombine.low %v331_v27, %v335_v12  ;;  %v394_v12 = vld [vmem:[#allocation5 + $0xa90] sm:$0xff] }
 0x1bb   :  { %3609 = vmatpush1.bf16.msra.mxu0 %v4146_v20  ;;  %3773 = vmatpush1.bf16.msra.mxu1 %v4148_v21  ;;  %v390_v20 = vld [vmem:[#allocation5 + $0xa70] sm:$0xff]  ;;  %v387_v21 = vld [vmem:[#allocation5 + $0xa58] sm:$0xff] }
 0x1bc   :  { %3610 = vmatprep.subr.bf16.mxu0 %v4155_v23  ;;  %3774 = vmatprep.subr.bf16.mxu1 %v4157_v57  ;;  %v391_v23 = vld [vmem:[#allocation5 + $0xa78] sm:$0xff]  ;;  %v4210_v57 = vcombine.low %v378_v9, %v382_v10  ;;  %v4219_v26 = vcombine.high %v386_v19, %v390_v20 }
 0x1bd   :  { %3640 = vmatprep.mubr.bf16.mxu0 %v4654_v32  ;;  %3804 = vmatprep.mubr.bf16.mxu1 %v4654_v32  ;;  %v4181_v32 = vcombine.high %v347_v42, %v351_v43  ;;  %v4221_v27 = vcombine.high %v387_v21, %v391_v23  ;;  %v4220_v15 = vcombine.low %v387_v21, %v391_v23  ;;  %v410_v43 = vld [vmem:[#allocation5 + $0xb10] sm:$0xff] }
 0x1be   :  { %v450_v23 = vld [vmem:[#allocation5 + $0xc50] sm:$0xff] }
 0x1bf   :  { %3611 = vmatpush1.bf16.msra.mxu0 %v4154_v28  ;;  %3775 = vmatpush1.bf16.msra.mxu1 %v4156_v29  ;;  %v398_v28 = vld [vmem:[#allocation5 + $0xab0] sm:$0xff]  ;;  %v395_v29 = vld [vmem:[#allocation5 + $0xa98] sm:$0xff] }
 0x1c0   :  { %3612 = vmatprep.subr.bf16.mxu0 %v4163_v30  ;;  %3776 = vmatprep.subr.bf16.mxu1 %v4165_v31  ;;  %v399_v30 = vld [vmem:[#allocation5 + $0xab8] sm:$0xff]  ;;  %v4218_v31 = vcombine.low %v386_v19, %v390_v20  ;;  %v4227_v33 = vcombine.high %v394_v12, %v398_v28 }
 0x1c1   :  { %v4229_v34 = vcombine.high %v395_v29, %v399_v30  ;;  %v4228_v40 = vcombine.low %v395_v29, %v399_v30  ;;  %v458_v30 = vld [vmem:[#allocation5 + $0xc90] sm:$0xff] }
 0x1c3   :  { %3613 = vmatpush1.bf16.msra.mxu0 %v4162_v37  ;;  %3777 = vmatpush1.bf16.msra.mxu1 %v4164_v53  ;;  %v406_v37 = vld [vmem:[#allocation5 + $0xaf0] sm:$0xff]  ;;  %v403_v53 = vld [vmem:[#allocation5 + $0xad8] sm:$0xff] }
 0x1c4   :  { %3614 = vmatprep.subr.bf16.mxu0 %v4171_v22  ;;  %3778 = vmatprep.subr.bf16.mxu1 %v4173_v38  ;;  %v407_v22 = vld [vmem:[#allocation5 + $0xaf8] sm:$0xff]  ;;  %v4226_v38 = vcombine.low %v394_v12, %v398_v28  ;;  %v4235_v41 = vcombine.high %v402_v35, %v406_v37 }
 0x1c5   :  { %v4237_v42 = vcombine.high %v403_v53, %v407_v22  ;;  %v4236_v47 = vcombine.low %v403_v53, %v407_v22  ;;  %v466_v22 = vld [vmem:[#allocation5 + $0xcd0] sm:$0xff] }
 0x1c7   :  { %3615 = vmatpush1.bf16.msra.mxu0 %v4170_v44  ;;  %3779 = vmatpush1.bf16.msra.mxu1 %v4172_v45  ;;  %v414_v44 = vld [vmem:[#allocation5 + $0xb30] sm:$0xff]  ;;  %v411_v45 = vld [vmem:[#allocation5 + $0xb18] sm:$0xff] }
 0x1c8   :  { %3616 = vmatprep.subr.bf16.mxu0 %v4179_v25  ;;  %3780 = vmatprep.subr.bf16.mxu1 %v4181_v32  ;;  %v415_v25 = vld [vmem:[#allocation5 + $0xb38] sm:$0xff]  ;;  %v4234_v32 = vcombine.low %v402_v35, %v406_v37  ;;  %v4243_v48 = vcombine.high %v410_v43, %v414_v44 }
 0x1c9   :  { %v4245_v49 = vcombine.high %v411_v45, %v415_v25  ;;  %v4244_v58 = vcombine.low %v411_v45, %v415_v25  ;;  %v474_v25 = vld [vmem:[#allocation5 + $0xd10] sm:$0xff] }
 0x1cb   :  { %3617 = vmatpush1.bf16.msra.mxu0 %v4178_v51  ;;  %3781 = vmatpush1.bf16.msra.mxu1 %v4180_v52  ;;  %v422_v51 = vld [vmem:[#allocation5 + $0xb70] sm:$0xff]  ;;  %v419_v52 = vld [vmem:[#allocation5 + $0xb58] sm:$0xff] }
 0x1cc   :  { %3618 = vmatprep.subr.bf16.mxu0 %v4187_v54  ;;  %3782 = vmatprep.subr.bf16.mxu1 %v4189_v56  ;;  %v423_v54 = vld [vmem:[#allocation5 + $0xb78] sm:$0xff]  ;;  %v4242_v56 = vcombine.low %v410_v43, %v414_v44  ;;  %v4251_v59 = vcombine.high %v418_v50, %v422_v51 }
 0x1cd   :  { %v4253_v60 = vcombine.high %v419_v52, %v423_v54  ;;  %v4252_v2 = vcombine.low %v419_v52, %v423_v54  ;;  %v482_v54 = vld [vmem:[#allocation5 + $0xd50] sm:$0xff] }
 0x1cf   :  { %3619 = vmatpush1.bf16.msra.mxu0 %v4186_v62  ;;  %3783 = vmatpush1.bf16.msra.mxu1 %v4188_v63  ;;  %v430_v62 = vld [vmem:[#allocation5 + $0xbb0] sm:$0xff]  ;;  %v427_v63 = vld [vmem:[#allocation5 + $0xb98] sm:$0xff] }
 0x1d0   :  { %3620 = vmatprep.subr.bf16.mxu0 %v4195_v0  ;;  %3784 = vmatprep.subr.bf16.mxu1 %v4197_v1  ;;  %v431_v0 = vld [vmem:[#allocation5 + $0xbb8] sm:$0xff]  ;;  %v4250_v1 = vcombine.low %v418_v50, %v422_v51  ;;  %v4259_v39 = vcombine.high %v426_v61, %v430_v62 }
 0x1d1   :  { %v4261_v3 = vcombine.high %v427_v63, %v431_v0  ;;  %v4260_v9 = vcombine.low %v427_v63, %v431_v0 }
 0x1d3   :  { %3621 = vmatpush1.bf16.msra.mxu0 %v4194_v5  ;;  %3785 = vmatpush1.bf16.msra.mxu1 %v4196_v6  ;;  %v438_v5 = vld [vmem:[#allocation5 + $0xbf0] sm:$0xff]  ;;  %v435_v6 = vld [vmem:[#allocation5 + $0xbd8] sm:$0xff] }
 0x1d4   :  { %3622 = vmatprep.subr.bf16.mxu0 %v4203_v7  ;;  %3786 = vmatprep.subr.bf16.mxu1 %v4205_v8  ;;  %v439_v7 = vld [vmem:[#allocation5 + $0xbf8] sm:$0xff]  ;;  %v4258_v8 = vcombine.low %v426_v61, %v430_v62  ;;  %v4267_v10 = vcombine.high %v434_v4, %v438_v5  ;;  %v4697_v62 = vld [vmem:[#allocation7] sm:$0xff] }
 0x1d5   :  { %v4269_v11 = vcombine.high %v435_v6, %v439_v7  ;;  %v4268_v19 = vcombine.low %v435_v6, %v439_v7  ;;  %v491_v7 = vld [vmem:[#allocation5 + $0xd98] sm:$0xff] }
 0x1d7   :  { %3623 = vmatpush1.bf16.msra.mxu0 %v4202_v14  ;;  %3787 = vmatpush1.bf16.msra.mxu1 %v4204_v16  ;;  %v446_v14 = vld [vmem:[#allocation5 + $0xc30] sm:$0xff]  ;;  %v443_v16 = vld [vmem:[#allocation5 + $0xc18] sm:$0xff] }
 0x1d8   :  { %3624 = vmatprep.subr.bf16.mxu0 %v4211_v17  ;;  %3788 = vmatprep.subr.bf16.mxu1 %v4213_v18  ;;  %v447_v17 = vld [vmem:[#allocation5 + $0xc38] sm:$0xff]  ;;  %v4266_v18 = vcombine.low %v434_v4, %v438_v5  ;;  %v4275_v20 = vcombine.high %v442_v13, %v446_v14  ;;  %v490_v4 = vld [vmem:[#allocation5 + $0xd90] sm:$0xff] }
 0x1d9   :  { %v4277_v21 = vcombine.high %v443_v16, %v447_v17  ;;  %v4276_v12 = vcombine.low %v443_v16, %v447_v17  ;;  %v494_v5 = vld [vmem:[#allocation5 + $0xdb0] sm:$0xff] }
 0x1da   :  { %v4323_v16 = vcombine.high %v490_v4, %v494_v5 }
 0x1db   :  { %3625 = vmatpush1.bf16.msra.mxu0 %v4210_v57  ;;  %3789 = vmatpush1.bf16.msra.mxu1 %v4212_v24  ;;  %v454_v57 = vld [vmem:[#allocation5 + $0xc70] sm:$0xff]  ;;  %v451_v24 = vld [vmem:[#allocation5 + $0xc58] sm:$0xff] }
 0x1dc   :  { %3626 = vmatprep.subr.bf16.mxu0 %v4219_v26  ;;  %3790 = vmatprep.subr.bf16.mxu1 %v4221_v27  ;;  %v455_v26 = vld [vmem:[#allocation5 + $0xc78] sm:$0xff]  ;;  %v4274_v27 = vcombine.low %v442_v13, %v446_v14  ;;  %v4283_v28 = vcombine.high %v450_v23, %v454_v57 }
 0x1dd   :  { %v4285_v29 = vcombine.high %v451_v24, %v455_v26  ;;  %v4284_v35 = vcombine.low %v451_v24, %v455_v26  ;;  %v499_v24 = vld [vmem:[#allocation5 + $0xdd8] sm:$0xff] }
 0x1de   :  { %v503_v26 = vld [vmem:[#allocation5 + $0xdf8] sm:$0xff] }
 0x1df   :  { %3627 = vmatpush1.bf16.msra.mxu0 %v4218_v31  ;;  %3791 = vmatpush1.bf16.msra.mxu1 %v4220_v15  ;;  %v462_v31 = vld [vmem:[#allocation5 + $0xcb0] sm:$0xff]  ;;  %v459_v15 = vld [vmem:[#allocation5 + $0xc98] sm:$0xff] }
 0x1e0   :  { %3628 = vmatprep.subr.bf16.mxu0 %v4227_v33  ;;  %3792 = vmatprep.subr.bf16.mxu1 %v4229_v34  ;;  %v463_v33 = vld [vmem:[#allocation5 + $0xcb8] sm:$0xff]  ;;  %v4282_v34 = vcombine.low %v450_v23, %v454_v57  ;;  %v4291_v37 = vcombine.high %v458_v30, %v462_v31  ;;  %v4290_v43 = vcombine.low %v458_v30, %v462_v31 }
 0x1e1   :  { %v4293_v53 = vcombine.high %v459_v15, %v463_v33  ;;  %v4322_v30 = vcombine.low %v490_v4, %v494_v5 }
 0x1e3   :  { %3629 = vmatpush1.bf16.msra.mxu0 %v4226_v38  ;;  %3793 = vmatpush1.bf16.msra.mxu1 %v4228_v40  ;;  %v470_v38 = vld [vmem:[#allocation5 + $0xcf0] sm:$0xff]  ;;  %v467_v40 = vld [vmem:[#allocation5 + $0xcd8] sm:$0xff] }
 0x1e4   :  { %3630 = vmatprep.subr.bf16.mxu0 %v4235_v41  ;;  %3794 = vmatprep.subr.bf16.mxu1 %v4237_v42  ;;  %v471_v41 = vld [vmem:[#allocation5 + $0xcf8] sm:$0xff]  ;;  %v570_v42 = vlaneseq  ;;  %v4299_v44 = vcombine.high %v466_v22, %v470_v38  ;;  %v4298_v50 = vcombine.low %v466_v22, %v470_v38  ;;  %v506_v22 = vld [vmem:[#allocation5 + $0xe10] sm:$0xff] }
 0x1e5   :  { %v4301_v45 = vcombine.high %v467_v40, %v471_v41  ;;  %v4300_v51 = vcombine.low %v467_v40, %v471_v41  ;;  %v510_v38 = vld [vmem:[#allocation5 + $0xe30] sm:$0xff]  ;;  %v507_v40 = vld [vmem:[#allocation5 + $0xe18] sm:$0xff] }
 0x1e6   :  { %v511_v41 = vld [vmem:[#allocation5 + $0xe38] sm:$0xff] }
 0x1e7   :  { %3631 = vmatpush1.bf16.msra.mxu0 %v4234_v32  ;;  %3795 = vmatpush1.bf16.msra.mxu1 %v4236_v47  ;;  %v478_v32 = vld [vmem:[#allocation5 + $0xd30] sm:$0xff]  ;;  %v475_v47 = vld [vmem:[#allocation5 + $0xd18] sm:$0xff] }
 0x1e8   :  { %3632 = vmatprep.subr.bf16.mxu0 %v4243_v48  ;;  %3796 = vmatprep.subr.bf16.mxu1 %v4245_v49  ;;  %v479_v48 = vld [vmem:[#allocation5 + $0xd38] sm:$0xff]  ;;  %v4694_v49 = vshrl.u32 %v570_v42, 7  ;;  %v4306_v61 = vcombine.low %v474_v25, %v478_v32 }
 0x1e9   :  { %v4309_v52 = vcombine.high %v475_v47, %v479_v48 }
 0x1ea   :  { %v580_v63 = vsub.s32 2, %v4694_v49  ;;  %v576_v0 = vsub.s32 1, %v4694_v49 }
 0x1eb   :  { %3633 = vmatpush1.bf16.msra.mxu0 %v4242_v56  ;;  %3797 = vmatpush1.bf16.msra.mxu1 %v4244_v58  ;;  %v486_v56 = vld [vmem:[#allocation5 + $0xd70] sm:$0xff]  ;;  %v572_v58 = vsub.s32 0, %v4694_v49 }
 0x1ec   :  { %3634 = vmatprep.subr.bf16.mxu0 %v4251_v59  ;;  %3798 = vmatprep.subr.bf16.mxu1 %v4253_v60  ;;  %v483_v59 = vld [vmem:[#allocation5 + $0xd58] sm:$0xff] }
 0x1ed   :  { %v487_v60 = vld [vmem:[#allocation5 + $0xd78] sm:$0xff]  ;;  %v573_v6 = vrot.slane %v4697_v62, %v572_v58 }
 0x1ee   :  { %v4316_v14 = vcombine.low %v483_v59, %v487_v60  ;;  %v527_v58 = vld [vmem:[#allocation5 + $0xeb8] sm:$0xff] }
 0x1ef   :  { %3635 = vmatpush1.bf16.msra.mxu0 %v4250_v1  ;;  %3799 = vmatpush1.bf16.msra.mxu1 %v4252_v2  ;;  %v4308_v1 = vcombine.low %v475_v47, %v479_v48  ;;  %v584_v2 = vsub.s32 3, %v4694_v49  ;;  %v519_v47 = vld [vmem:[#allocation5 + $0xe78] sm:$0xff]  ;;  %v4338_v48 = vcombine.low %v506_v22, %v510_v38 }
 0x1f0   :  { %3636 = vmatprep.subr.bf16.mxu0 %v4259_v39  ;;  %3800 = vmatprep.subr.bf16.mxu1 %v4261_v3  ;;  %v4315_v39 = vcombine.high %v482_v54, %v486_v56  ;;  %v4317_v3 = vcombine.high %v483_v59, %v487_v60 }
 0x1f1   :  { %v585_v13 = vrot.slane %v4697_v62, %v584_v2  ;;  %v531_v2 = vld [vmem:[#allocation5 + $0xed8] sm:$0xff] }
 0x1f3   :  { %3637 = vmatpush1.bf16.msra.mxu0 %v4258_v8  ;;  %3801 = vmatpush1.bf16.msra.mxu1 %v4260_v9  ;;  %v495_v8 = vld [vmem:[#allocation5 + $0xdb8] sm:$0xff]  ;;  %v581_v9 = vrot.slane %v4697_v62, %v580_v63 }
 0x1f4   :  { %3638 = vmatprep.subr.bf16.mxu0 %v4267_v10  ;;  %3802 = vmatprep.subr.bf16.mxu1 %v4269_v11  ;;  %v577_v10 = vrot.slane %v4697_v62, %v576_v0  ;;  %v4314_v11 = vcombine.low %v482_v54, %v486_v56  ;;  %v526_v54 = vld [vmem:[#allocation5 + $0xeb0] sm:$0xff]  ;;  %v523_v56 = vld [vmem:[#allocation5 + $0xe98] sm:$0xff] }
 0x1f5   :  { %v4357_v63 = vcombine.high %v523_v56, %v527_v58  ;;  %v530_v0 = vld [vmem:[#allocation5 + $0xed0] sm:$0xff]  ;;  %v4356_v4 = vcombine.low %v523_v56, %v527_v58 }
 0x1f7   :  { %3639 = vmatpush1.bf16.msra.mxu0 %v4266_v18  ;;  %3803 = vmatpush1.bf16.msra.mxu1 %v4268_v19  ;;  %v4325_v18 = vcombine.high %v491_v7, %v495_v8  ;;  %v498_v19 = vld [vmem:[#allocation5 + $0xdd0] sm:$0xff] }
 0x1f8   :  { %3649 = vmatprep.subr.bf16.mxu0 %v4275_v20  ;;  %3813 = vmatprep.subr.bf16.mxu1 %v4277_v21  ;;  %v502_v20 = vld [vmem:[#allocation5 + $0xdf0] sm:$0xff] }
 0x1f9   :  { %v4330_v42 = vcombine.low %v498_v19, %v502_v20 }
 0x1fa   :  { %3641 = vmatmul.mubr.bf16.vlgmr.msra.gmra.mrb[4].mxu0 %v4662_v36  ;;  %3805 = vmatmul.mubr.bf16.vlgmr.msra.gmra.mrb[4].mxu1 %v4662_v36  ;;  %v4292_v36 = vcombine.low %v459_v15, %v463_v33 }
 0x1fb   :  { %3650 = vmatpush1.bf16.msra.mxu0 %v4274_v27  ;;  %3814 = vmatpush1.bf16.msra.mxu1 %v4276_v12 }
 0x1fc   :  { %3651 = vmatprep.subr.bf16.mxu0 %v4283_v28  ;;  %3815 = vmatprep.subr.bf16.mxu1 %v4285_v29 }
 0x1fd   :  { %3681 = vmatprep.mubr.bf16.mxu0 %v4668_v46  ;;  %3845 = vmatprep.mubr.bf16.mxu1 %v4668_v46  ;;  %v4307_v46 = vcombine.high %v474_v25, %v478_v32  ;;  %v518_v25 = vld [vmem:[#allocation5 + $0xe70] sm:$0xff]  ;;  %v515_v32 = vld [vmem:[#allocation5 + $0xe58] sm:$0xff] }
 0x1fe   :  { %v4348_v60 = vcombine.low %v515_v32, %v519_v47 }
 0x1ff   :  { %3652 = vmatpush1.bf16.msra.mxu0 %v4282_v34  ;;  %3816 = vmatpush1.bf16.msra.mxu1 %v4284_v35  ;;  %v4324_v34 = vcombine.low %v491_v7, %v495_v8  ;;  %v4331_v35 = vcombine.high %v498_v19, %v502_v20  ;;  %v538_v7 = vld [vmem:[#allocation5 + $0xf10] sm:$0xff]  ;;  %v547_v19 = vld [vmem:[#allocation5 + $0xf58] sm:$0xff] }
 0x200   :  { %3653 = vmatprep.subr.bf16.mxu0 %v4291_v37  ;;  %3817 = vmatprep.subr.bf16.mxu1 %v4293_v53  ;;  %v4333_v53 = vcombine.high %v499_v24, %v503_v26  ;;  %v542_v8 = vld [vmem:[#allocation5 + $0xf30] sm:$0xff]  ;;  %v551_v20 = vld [vmem:[#allocation5 + $0xf78] sm:$0xff] }
 0x203   :  { %3654 = vmatpush1.bf16.msra.mxu0 %v4290_v43  ;;  %3818 = vmatpush1.bf16.msra.mxu1 %v4292_v36  ;;  %v4332_v43 = vcombine.low %v499_v24, %v503_v26  ;;  %v4339_v36 = vcombine.high %v506_v22, %v510_v38  ;;  %v4381_v24 = vcombine.high %v547_v19, %v551_v20  ;;  %v554_v26 = vld [vmem:[#allocation5 + $0xf90] sm:$0xff] }
 0x204   :  { %3655 = vmatprep.subr.bf16.mxu0 %v4299_v44  ;;  %3819 = vmatprep.subr.bf16.mxu1 %v4301_v45  ;;  %v4341_v44 = vcombine.high %v507_v40, %v511_v41  ;;  %v514_v45 = vld [vmem:[#allocation5 + $0xe50] sm:$0xff] }
 0x205   :  { %v4346_v59 = vcombine.low %v514_v45, %v518_v25 }
 0x207   :  { %3656 = vmatpush1.bf16.msra.mxu0 %v4298_v50  ;;  %3820 = vmatpush1.bf16.msra.mxu1 %v4300_v51  ;;  %v4340_v50 = vcombine.low %v507_v40, %v511_v41  ;;  %v4347_v51 = vcombine.high %v514_v45, %v518_v25  ;;  %v600_v45 = vsub.s32 7, %v4694_v49 }
 0x208   :  { %3657 = vmatprep.subr.bf16.mxu0 %v4307_v46  ;;  %3821 = vmatprep.subr.bf16.mxu1 %v4309_v52  ;;  %v4349_v46 = vcombine.high %v515_v32, %v519_v47  ;;  %v522_v52 = vld [vmem:[#allocation5 + $0xe90] sm:$0xff] }
 0x20b   :  { %3658 = vmatpush1.bf16.msra.mxu0 %v4306_v61  ;;  %3822 = vmatpush1.bf16.msra.mxu1 %v4308_v1  ;;  %v4355_v61 = vcombine.high %v522_v52, %v526_v54  ;;  %v534_v1 = vld [vmem:[#allocation5 + $0xef0] sm:$0xff] }
 0x20c   :  { %3659 = vmatprep.subr.bf16.mxu0 %v4315_v39  ;;  %3823 = vmatprep.subr.bf16.mxu1 %v4317_v3  ;;  %v535_v39 = vld [vmem:[#allocation5 + $0xef8] sm:$0xff]  ;;  %v4354_v3 = vcombine.low %v522_v52, %v526_v54  ;;  %v4363_v5 = vcombine.high %v530_v0, %v534_v1 }
 0x20d   :  { %v3355_v17 = vpop.f32.mrb[0].mxu0  ;;  %v3519_v23 = vpop.f32.mrb[0].mxu1 }
 0x20e   :  { %v4398_v21 = vadd.f32 %v3355_v17, %v573_v6  ;;  %v3357_v57 = vpop.f32.mrb[1].mxu0  ;;  %v4400_v27 = vadd.f32 %v3519_v23, %v581_v9  ;;  %v3521_v28 = vpop.f32.mrb[1].mxu1  ;;  %v4365_v6 = vcombine.high %v531_v2, %v535_v39  ;;  %v539_v9 = vld [vmem:[#allocation5 + $0xf18] sm:$0xff]  ;;  %v546_v17 = vld [vmem:[#allocation5 + $0xf50] sm:$0xff] }
 0x20f   :  { %v4399_v12 = vadd.f32 %v3357_v57, %v577_v10  ;;  %v3359_v29 = vpop.f32.mrb[2].mxu0  ;;  %3660 = vmatpush1.bf16.msra.mxu0 %v4314_v11  ;;  %v4401_v31 = vadd.f32 %v3521_v28, %v585_v13  ;;  %v3523_v15 = vpop.f32.mrb[2].mxu1  ;;  %3824 = vmatpush1.bf16.msra.mxu1 %v4316_v14  ;;  %v543_v10 = vld [vmem:[#allocation5 + $0xf38] sm:$0xff]  ;;  %v4362_v11 = vcombine.low %v530_v0, %v534_v1 }
 0x210   :  { %3854 = vst [vmem:[#allocation8] sm:$0xff] %v4398_v21  ;;  %v3360_v33 = vpop.f32.mrb[3].mxu0  ;;  %3661 = vmatprep.subr.bf16.mxu0 %v4323_v16  ;;  %3856 = vst [vmem:[#allocation8 + $0x10] sm:$0xff] %v4400_v27  ;;  %v3524_v37 = vpop.f32.mrb[3].mxu1  ;;  %3825 = vmatprep.subr.bf16.mxu1 %v4325_v18  ;;  %v4364_v13 = vcombine.low %v531_v2, %v535_v39  ;;  %v4371_v14 = vcombine.high %v538_v7, %v542_v8  ;;  %v550_v18 = vld [vmem:[#allocation5 + $0xf70] sm:$0xff]  ;;  %v559_v28 = vld [vmem:[#allocation5 + $0xfb8] sm:$0xff] }
 0x211   :  { %3855 = vst [vmem:[#allocation8 + $0x8] sm:$0xff] %v4399_v12  ;;  %3857 = vst [vmem:[#allocation8 + $0x18] sm:$0xff] %v4401_v31  ;;  %v4373_v16 = vcombine.high %v539_v9, %v543_v10  ;;  %v4370_v21 = vcombine.low %v538_v7, %v542_v8  ;;  %v4372_v23 = vcombine.low %v539_v9, %v543_v10  ;;  %v558_v27 = vld [vmem:[#allocation5 + $0xfb0] sm:$0xff]  ;;  %v555_v12 = vld [vmem:[#allocation5 + $0xf98] sm:$0xff] }
 0x212   :  { %v4379_v57 = vcombine.high %v546_v17, %v550_v18  ;;  %v4378_v29 = vcombine.low %v546_v17, %v550_v18  ;;  %v4387_v31 = vcombine.high %v554_v26, %v558_v27  ;;  %v4389_v15 = vcombine.high %v555_v12, %v559_v28  ;;  %v562_v33 = vld [vmem:[#allocation5 + $0xfd0] sm:$0xff]  ;;  %v567_v37 = vld [vmem:[#allocation5 + $0xff8] sm:$0xff] }
 0x213   :  { %3662 = vmatpush1.bf16.msra.mxu0 %v4322_v30  ;;  %3826 = vmatpush1.bf16.msra.mxu1 %v4324_v34  ;;  %v4380_v30 = vcombine.low %v547_v19, %v551_v20  ;;  %v566_v34 = vld [vmem:[#allocation5 + $0xff0] sm:$0xff]  ;;  %v4388_v22 = vcombine.low %v555_v12, %v559_v28 }
 0x214   :  { %3663 = vmatprep.subr.bf16.mxu0 %v4331_v35  ;;  %3827 = vmatprep.subr.bf16.mxu1 %v4333_v53  ;;  %v563_v35 = vld [vmem:[#allocation5 + $0xfd8] sm:$0xff]  ;;  %v4386_v53 = vcombine.low %v554_v26, %v558_v27  ;;  %v4395_v38 = vcombine.high %v562_v33, %v566_v34  ;;  %v4394_v41 = vcombine.low %v562_v33, %v566_v34 }
 0x215   :  { %v4397_v40 = vcombine.high %v563_v35, %v567_v37 }
 0x217   :  { %3664 = vmatpush1.bf16.msra.mxu0 %v4330_v42  ;;  %3828 = vmatpush1.bf16.msra.mxu1 %v4332_v43  ;;  %v4396_v42 = vcombine.low %v563_v35, %v567_v37  ;;  %v588_v43 = vsub.s32 4, %v4694_v49 }
 0x218   :  { %3665 = vmatprep.subr.bf16.mxu0 %v4339_v36  ;;  %3829 = vmatprep.subr.bf16.mxu1 %v4341_v44  ;;  %v596_v36 = vsub.s32 6, %v4694_v49  ;;  %v592_v44 = vsub.s32 5, %v4694_v49 }
 0x219   :  { %v589_v25 = vrot.slane %v4697_v62, %v588_v43 }
 0x21a   :  { %v597_v32 = vrot.slane %v4697_v62, %v596_v36  ;;  %v593_v47 = vrot.slane %v4697_v62, %v592_v44 }
 0x21b   :  { %3666 = vmatpush1.bf16.msra.mxu0 %v4338_v48  ;;  %3830 = vmatpush1.bf16.msra.mxu1 %v4340_v50  ;;  %v601_v48 = vrot.slane %v4697_v62, %v600_v45 }
 0x21c   :  { %3667 = vmatprep.subr.bf16.mxu0 %v4347_v51  ;;  %3831 = vmatprep.subr.bf16.mxu1 %v4349_v46 }
 0x21f   :  { %3668 = vmatpush1.bf16.msra.mxu0 %v4346_v59  ;;  %3832 = vmatpush1.bf16.msra.mxu1 %v4348_v60 }
 0x220   :  { %3669 = vmatprep.subr.bf16.mxu0 %v4355_v61  ;;  %3833 = vmatprep.subr.bf16.mxu1 %v4357_v63 }
 0x223   :  { %3670 = vmatpush1.bf16.msra.mxu0 %v4354_v3  ;;  %3834 = vmatpush1.bf16.msra.mxu1 %v4356_v4 }
 0x224   :  { %3671 = vmatprep.subr.bf16.mxu0 %v4363_v5  ;;  %3835 = vmatprep.subr.bf16.mxu1 %v4365_v6 }
 0x227   :  { %3672 = vmatpush1.bf16.msra.mxu0 %v4362_v11  ;;  %3836 = vmatpush1.bf16.msra.mxu1 %v4364_v13 }
 0x228   :  { %3673 = vmatprep.subr.bf16.mxu0 %v4371_v14  ;;  %3837 = vmatprep.subr.bf16.mxu1 %v4373_v16 }
 0x22b   :  { %3674 = vmatpush1.bf16.msra.mxu0 %v4370_v21  ;;  %3838 = vmatpush1.bf16.msra.mxu1 %v4372_v23 }
 0x22c   :  { %3675 = vmatprep.subr.bf16.mxu0 %v4379_v57  ;;  %3839 = vmatprep.subr.bf16.mxu1 %v4381_v24 }
 0x22f   :  { %3676 = vmatpush1.bf16.msra.mxu0 %v4378_v29  ;;  %3840 = vmatpush1.bf16.msra.mxu1 %v4380_v30 }
 0x230   :  { %3677 = vmatprep.subr.bf16.mxu0 %v4387_v31  ;;  %3841 = vmatprep.subr.bf16.mxu1 %v4389_v15 }
 0x233   :  { %3678 = vmatpush1.bf16.msra.mxu0 %v4386_v53  ;;  %3842 = vmatpush1.bf16.msra.mxu1 %v4388_v22 }
 0x234   :  { %3679 = vmatprep.subr.bf16.mxu0 %v4395_v38  ;;  %3843 = vmatprep.subr.bf16.mxu1 %v4397_v40 }
 0x237   :  { %3680 = vmatpush1.bf16.msra.mxu0 %v4394_v41  ;;  %3844 = vmatpush1.bf16.msra.mxu1 %v4396_v42 }
 0x23a   :  { %3682 = vmatmul.mubr.bf16.vlgmr.msra.gmra.mrb[4].mxu0 %v4676_v55  ;;  %3846 = vmatmul.mubr.bf16.vlgmr.msra.gmra.mrb[4].mxu1 %v4676_v55 }
 0x30d   :  { %v3683_v50 = vpop.f32.mrb[4].mxu0  ;;  %v3847_v51 = vpop.f32.mrb[4].mxu1 }
 0x30e   :  { %v4402_v55 = vadd.f32 %v3683_v50, %v589_v25  ;;  %v3685_v46 = vpop.f32.mrb[5].mxu0  ;;  %v4404_v52 = vadd.f32 %v3847_v51, %v597_v32  ;;  %v3849_v56 = vpop.f32.mrb[5].mxu1 }
 0x30f   :  { %v4403_v54 = vadd.f32 %v3685_v46, %v593_v47  ;;  %v3687_v58 = vpop.f32.mrb[6].mxu0  ;;  %v4405_v49 = vadd.f32 %v3849_v56, %v601_v48  ;;  %v3851_v59 = vpop.f32.mrb[6].mxu1 }
 0x310   :  { %3858 = vst [vmem:[#allocation8 + $0x20] sm:$0xff] %v4402_v55  ;;  %v3688_v60 = vpop.f32.mrb[7].mxu0  ;;  %3860 = vst [vmem:[#allocation8 + $0x30] sm:$0xff] %v4404_v52  ;;  %v3852_v61 = vpop.f32.mrb[7].mxu1 }
 0x311   :  { %3859 = vst [vmem:[#allocation8 + $0x28] sm:$0xff] %v4403_v54  ;;  %3861 = vst [vmem:[#allocation8 + $0x38] sm:$0xff] %v4405_v49 }
 0x312   :  { %4545 = shalt.err (!%p4542_p0)
}
 0x313   :  { %s4546_s25 = scalar_lea.hbm %s4731_s3, 1024 }
 0x314   :  { %p4547_p1 = scmp.ne.s32.totalorder %s4731_s3, %s4546_s25  ;;  %p4550_p2 = scmp.lt.u32.totalorder %s4546_s25, %s4731_s3 }
 0x316   :  { %p4552_p3 = pnand %p4550_p2, %p4547_p1 }
 0x318   :  { %4555 = shalt.err (!%p4552_p3)
}
 0x319   :  { %3871 = dma.vmem_to_hbm [thread:$0]  %s3869_s21, 1024, %s4731_s3, [#allocation4]  }
 0x31a   :  { %4560 = dma.done.wait [#allocation4], 1024  }
 0x31b   :  { %4561 = vsyncadd [#allocation4], 4294966272 }
 0x31c   :  { %3875 = vsyncpa [#allocation3], 1 }
 0x31d   :  { %3876 = vsyncpa [#allocation6], 1 }
 0x31e   :  { %3877 = vsyncpa [#allocation4], 1 }

</bundles_post_ra>
